<compile_context>
chip_gen: v7x
topology: tpu7x:2x2x1
jax: 0.10.0
libtpu: 0.0.40
codegen_flags: <defaults>
</compile_context>

<pallas_src>
import functools

import jax
import jax.numpy as jnp
from jax.experimental import pallas as pl
from jax.experimental.pallas import tpu as pltpu


LEAKY_SLOPE = 0.2
BN_EPS = 0.8  # nn.BatchNorm1d(out_feat, 0.8): second positional arg is eps


def _leaky_relu(x):
    return jnp.where(x > 0, x, LEAKY_SLOPE * x)


def _mxu_dot(a_f32, w_bf16):
    # bf16 x bf16 on the MXU, f32 accumulate. Only MXU operands are bf16.
    return jnp.dot(a_f32.astype(jnp.bfloat16), w_bf16,
                   preferred_element_type=jnp.float32)


def generator_fc_kernel(
    z_ref,
    w1_ref, b1_ref,
    w2_ref, b2_ref, g2_ref, be2_ref,
    w3_hbm, b3_ref, g3_ref, be3_ref,
    w4_hbm, b4_ref, g4_ref, be4_ref,
    w5_hbm, b5_ref,
    out_ref,
    w3_vmem, w4_vmem, w5_vmem, dma_sem,
):
    # Kick off HBM->VMEM streaming of the large weights first thing (in the
    # order they are consumed); they arrive while the early small layers run.
    cp3 = pltpu.make_async_copy(w3_hbm, w3_vmem, dma_sem.at[0])
    cp4 = pltpu.make_async_copy(w4_hbm, w4_vmem, dma_sem.at[1])
    cp5 = pltpu.make_async_copy(w5_hbm, w5_vmem, dma_sem.at[2])
    cp3.start()
    cp4.start()
    cp5.start()

    x = z_ref[...]

    # Block 1: Linear(latent, 128) + LeakyReLU (no BatchNorm)
    h = _mxu_dot(x, w1_ref[...]) + b1_ref[...]
    h = _leaky_relu(h)

    def bn_block(h, w, b, g, be):
        # Linear (bf16 MXU operands, f32 accumulate)
        h = _mxu_dot(h, w) + b
        # BatchNorm1d, training mode: per-feature batch stats, biased variance.
        # Fused single pass: sum + sum-of-squares, var = E[x^2] - mean^2.
        inv_b = 1.0 / h.shape[0]
        s1 = jnp.sum(h, axis=0, keepdims=True)
        s2 = jnp.sum(h * h, axis=0, keepdims=True)
        mean = s1 * inv_b
        var = s2 * inv_b - mean * mean
        h = (h - mean) * jax.lax.rsqrt(var + BN_EPS) * g + be
        # LeakyReLU(0.2)
        return _leaky_relu(h)

    h = bn_block(h, w2_ref[...], b2_ref[...], g2_ref[...], be2_ref[...])   # 128 -> 256
    cp3.wait()
    h = bn_block(h, w3_vmem[...], b3_ref[...], g3_ref[...], be3_ref[...])  # 256 -> 512
    cp4.wait()
    h = bn_block(h, w4_vmem[...], b4_ref[...], g4_ref[...], be4_ref[...])  # 512 -> 1024
    cp5.wait()

    # Final Linear(1024, out_pad)
    logits = _mxu_dot(h, w5_vmem[...]) + b5_ref[...]

    # Forward value of the straight-through binary neuron:
    #   heaviside(sigmoid(x) - 0.5, 0) == 1 if x > 0 else 0  (0 at x == 0).
    out_ref[...] = (logits > 0).astype(out_ref.dtype)


def _round_up(n, m):
    return (n + m - 1) // m * m


def generator_fc_forward(z, params, img_shape):
    """z: (B, latent_dim) float32. params: dict of weights. Returns (B, C, H, W) f32."""
    batch = z.shape[0]
    c, h_, w_ = img_shape
    out_dim = c * h_ * w_
    out_pad = _round_up(out_dim, 128)  # lane-dense output slab (unmasked stores)

    # Lane-pad the final layer with zero columns if needed; padded logits are 0
    # -> binary-neuron output 0 -> sliced off below. No-op when out_dim % 128 == 0.
    w5 = params["w5"]
    b5 = params["b5"]
    if out_pad != out_dim:
        w5 = jnp.pad(w5, ((0, 0), (0, out_pad - out_dim)))
        b5 = jnp.pad(b5, ((0, 0), (0, out_pad - out_dim)))

    args = (
        z,
        params["w1"], params["b1"],
        params["w2"], params["b2"], params["g2"], params["be2"],
        params["w3"], params["b3"], params["g3"], params["be3"],
        params["w4"], params["b4"], params["g4"], params["be4"],
        w5, b5,
    )

    vmem = pl.BlockSpec(memory_space=pltpu.MemorySpace.VMEM)
    hbm = pl.BlockSpec(memory_space=pl.ANY)
    in_specs = [
        vmem,                    # z
        vmem, vmem,              # w1, b1
        vmem, vmem, vmem, vmem,  # w2, b2, g2, be2
        hbm, vmem, vmem, vmem,   # w3 (manual DMA), b3, g3, be3
        hbm, vmem, vmem, vmem,   # w4 (manual DMA), b4, g4, be4
        hbm, vmem,               # w5 (manual DMA), b5
    ]

    out = pl.pallas_call(
        generator_fc_kernel,
        out_shape=jax.ShapeDtypeStruct((batch, out_pad), jnp.bfloat16),
        in_specs=in_specs,
        out_specs=vmem,
        scratch_shapes=[
            pltpu.VMEM(params["w3"].shape, jnp.bfloat16),                # (256, 512)
            pltpu.VMEM(params["w4"].shape, jnp.bfloat16),                # (512, 1024)
            pltpu.VMEM((params["w4"].shape[1], out_pad), jnp.bfloat16),  # (1024, out_pad)
            pltpu.SemaphoreType.DMA((3,)),
        ],
    )(*args)

    # Slice off lane padding, widen {0,1} bf16 -> f32, reshape to PyTorch NCHW.
    return out[:, :out_dim].astype(jnp.float32).reshape(batch, c, h_, w_)


def init_params(key, latent_dim, out_dim):
    """Deterministic synthetic parameter init (shapes match the PyTorch module).

    Linear weights are stored in bf16 (MXU operands / HBM bandwidth); biases
    and BatchNorm affine params stay f32.
    """
    dims = [latent_dim, 128, 256, 512, 1024, out_dim]
    keys = jax.random.split(key, 5)
    params = {}

    def linear(k, din, dout):
        kw, kb = jax.random.split(k)
        scale = 1.0 / jnp.sqrt(jnp.float32(din))
        w = jax.random.uniform(kw, (din, dout), jnp.float32, -scale, scale)
        b = jax.random.uniform(kb, (1, dout), jnp.float32, -scale, scale)
        return w.astype(jnp.bfloat16), b

    for i in range(5):
        params[f"w{i + 1}"], params[f"b{i + 1}"] = linear(keys[i], dims[i], dims[i + 1])

    # BatchNorm affine params: PyTorch default gamma=1, beta=0
    for name, d in (("2", dims[2]), ("3", dims[3]), ("4", dims[4])):
        params["g" + name] = jnp.ones((1, d), jnp.float32)
        params["be" + name] = jnp.zeros((1, d), jnp.float32)

    return params


if __name__ == "__main__":
    # Small, module-consistent shapes: opt.latent_dim=32, opt.channels=1, opt.img_size=16
    batch = 8          # > 1 required for train-mode BatchNorm semantics
    latent_dim = 32
    channels, img_size = 1, 16
    img_shape = (channels, img_size, img_size)
    out_dim = channels * img_size * img_size

    key = jax.random.PRNGKey(0)
    kz, kp = jax.random.split(key)
    z = jax.random.normal(kz, (batch, latent_dim), jnp.float32)
    params = init_params(kp, latent_dim, out_dim)

    fwd = jax.jit(functools.partial(generator_fc_forward, img_shape=img_shape))
    img = fwd(z, params)
    jax.block_until_ready(img)

    assert img.shape == (batch, channels, img_size, img_size)
    # Output of the straight-through binary neuron is exactly {0.0, 1.0}
    assert bool(jnp.all((img == 0.0) | (img == 1.0)))
    print("KERNEL_OK")
</pallas_src>

<mosaic_0001>
module attributes {stable_mosaic.version = 11 : i64} {
  func.func @generator_fc_kernel(%arg0: memref<8x32xf32, #tpu.memory_space<vmem>>, %arg1: memref<32x128xbf16, #tpu.memory_space<vmem>>, %arg2: memref<1x128xf32, #tpu.memory_space<vmem>>, %arg3: memref<128x256xbf16, #tpu.memory_space<vmem>>, %arg4: memref<1x256xf32, #tpu.memory_space<vmem>>, %arg5: memref<1x256xf32, #tpu.memory_space<vmem>>, %arg6: memref<1x256xf32, #tpu.memory_space<vmem>>, %arg7: memref<256x512xbf16, #tpu.memory_space<any>>, %arg8: memref<1x512xf32, #tpu.memory_space<vmem>>, %arg9: memref<1x512xf32, #tpu.memory_space<vmem>>, %arg10: memref<1x512xf32, #tpu.memory_space<vmem>>, %arg11: memref<512x1024xbf16, #tpu.memory_space<any>>, %arg12: memref<1x1024xf32, #tpu.memory_space<vmem>>, %arg13: memref<1x1024xf32, #tpu.memory_space<vmem>>, %arg14: memref<1x1024xf32, #tpu.memory_space<vmem>>, %arg15: memref<1024x256xbf16, #tpu.memory_space<any>>, %arg16: memref<1x256xf32, #tpu.memory_space<vmem>>, %arg17: memref<8x256xbf16, #tpu.memory_space<vmem>>, %arg18: memref<256x512xbf16, #tpu.memory_space<vmem>>, %arg19: memref<512x1024xbf16, #tpu.memory_space<vmem>>, %arg20: memref<1024x256xbf16, #tpu.memory_space<vmem>>, %arg21: memref<3x!tpu.dma_semaphore, #tpu.memory_space<semaphore_mem>>) attributes {dimension_semantics = [], scalar_prefetch = 0 : i64, scratch_operands = 4 : i64, tpu.core_type = #tpu.core_type<tc>} {
    %c0_i32 = arith.constant 0 : i32
    %0 = tpu.memref_slice %arg21[%c0_i32] : memref<3x!tpu.dma_semaphore, #tpu.memory_space<semaphore_mem>> -> memref<1x!tpu.dma_semaphore, #tpu.memory_space<semaphore_mem>>
    %1 = tpu.memref_squeeze %0 : memref<1x!tpu.dma_semaphore, #tpu.memory_space<semaphore_mem>> -> memref<!tpu.dma_semaphore, #tpu.memory_space<semaphore_mem>>
    tpu.enqueue_dma source(%arg7 : memref<256x512xbf16, #tpu.memory_space<any>>) target(%arg18 : memref<256x512xbf16, #tpu.memory_space<vmem>>) target_semaphore(%1 : memref<!tpu.dma_semaphore, #tpu.memory_space<semaphore_mem>>)
    %c1_i32 = arith.constant 1 : i32
    %2 = tpu.memref_slice %arg21[%c1_i32] : memref<3x!tpu.dma_semaphore, #tpu.memory_space<semaphore_mem>> -> memref<1x!tpu.dma_semaphore, #tpu.memory_space<semaphore_mem>>
    %3 = tpu.memref_squeeze %2 : memref<1x!tpu.dma_semaphore, #tpu.memory_space<semaphore_mem>> -> memref<!tpu.dma_semaphore, #tpu.memory_space<semaphore_mem>>
    tpu.enqueue_dma source(%arg11 : memref<512x1024xbf16, #tpu.memory_space<any>>) target(%arg19 : memref<512x1024xbf16, #tpu.memory_space<vmem>>) target_semaphore(%3 : memref<!tpu.dma_semaphore, #tpu.memory_space<semaphore_mem>>)
    %c2_i32 = arith.constant 2 : i32
    %4 = tpu.memref_slice %arg21[%c2_i32] : memref<3x!tpu.dma_semaphore, #tpu.memory_space<semaphore_mem>> -> memref<1x!tpu.dma_semaphore, #tpu.memory_space<semaphore_mem>>
    %5 = tpu.memref_squeeze %4 : memref<1x!tpu.dma_semaphore, #tpu.memory_space<semaphore_mem>> -> memref<!tpu.dma_semaphore, #tpu.memory_space<semaphore_mem>>
    tpu.enqueue_dma source(%arg15 : memref<1024x256xbf16, #tpu.memory_space<any>>) target(%arg20 : memref<1024x256xbf16, #tpu.memory_space<vmem>>) target_semaphore(%5 : memref<!tpu.dma_semaphore, #tpu.memory_space<semaphore_mem>>)
    %c0 = arith.constant 0 : index
    %c0_0 = arith.constant 0 : index
    %6 = vector.load %arg0[%c0, %c0_0] : memref<8x32xf32, #tpu.memory_space<vmem>>, vector<8x32xf32>
    %c0_1 = arith.constant 0 : index
    %c0_2 = arith.constant 0 : index
    %7 = vector.load %arg1[%c0_1, %c0_2] : memref<32x128xbf16, #tpu.memory_space<vmem>>, vector<32x128xbf16>
    %8 = arith.truncf %6 : vector<8x32xf32> to vector<8x32xbf16>
    %cst = arith.constant dense<0.000000e+00> : vector<8x128xf32>
    %9 = tpu.matmul %8, %7, %cst {dimension_numbers = #tpu.dot_dimension_numbers<[1], [0], [0], [1], [0, 0, 1, 1], [], []>} : vector<8x32xbf16>, vector<32x128xbf16>, vector<8x128xf32> -> vector<8x128xf32>
    %c0_3 = arith.constant 0 : index
    %c0_4 = arith.constant 0 : index
    %10 = vector.load %arg2[%c0_3, %c0_4] : memref<1x128xf32, #tpu.memory_space<vmem>>, vector<1x128xf32>
    %11 = vector.broadcast %10 : vector<1x128xf32> to vector<8x128xf32>
    %12 = arith.addf %9, %11 : vector<8x128xf32>
    %cst_5 = arith.constant 0.000000e+00 : f32
    %13 = vector.broadcast %cst_5 : f32 to vector<8x128xf32>
    %14 = arith.cmpf ogt, %12, %13 : vector<8x128xf32>
    %cst_6 = arith.constant 2.000000e-01 : f32
    %15 = vector.broadcast %cst_6 : f32 to vector<8x128xf32>
    %16 = arith.mulf %15, %12 : vector<8x128xf32>
    %17 = arith.select %14, %12, %16 : vector<8x128xi1>, vector<8x128xf32>
    %c0_7 = arith.constant 0 : index
    %c0_8 = arith.constant 0 : index
    %18 = vector.load %arg3[%c0_7, %c0_8] : memref<128x256xbf16, #tpu.memory_space<vmem>>, vector<128x256xbf16>
    %c0_9 = arith.constant 0 : index
    %c0_10 = arith.constant 0 : index
    %19 = vector.load %arg4[%c0_9, %c0_10] : memref<1x256xf32, #tpu.memory_space<vmem>>, vector<1x256xf32>
    %c0_11 = arith.constant 0 : index
    %c0_12 = arith.constant 0 : index
    %20 = vector.load %arg5[%c0_11, %c0_12] : memref<1x256xf32, #tpu.memory_space<vmem>>, vector<1x256xf32>
    %c0_13 = arith.constant 0 : index
    %c0_14 = arith.constant 0 : index
    %21 = vector.load %arg6[%c0_13, %c0_14] : memref<1x256xf32, #tpu.memory_space<vmem>>, vector<1x256xf32>
    %22 = arith.truncf %17 : vector<8x128xf32> to vector<8x128xbf16>
    %cst_15 = arith.constant dense<0.000000e+00> : vector<8x256xf32>
    %23 = tpu.matmul %22, %18, %cst_15 {dimension_numbers = #tpu.dot_dimension_numbers<[1], [0], [0], [1], [0, 0, 1, 1], [], []>} : vector<8x128xbf16>, vector<128x256xbf16>, vector<8x256xf32> -> vector<8x256xf32>
    %24 = vector.broadcast %19 : vector<1x256xf32> to vector<8x256xf32>
    %25 = arith.addf %23, %24 : vector<8x256xf32>
    %cst_16 = arith.constant dense<0.000000e+00> : vector<256xf32>
    %26 = vector.multi_reduction <add>, %25, %cst_16 [0] : vector<8x256xf32> to vector<256xf32>
    %27 = vector.shape_cast %26 : vector<256xf32> to vector<1x256xf32>
    %28 = arith.mulf %25, %25 : vector<8x256xf32>
    %cst_17 = arith.constant dense<0.000000e+00> : vector<256xf32>
    %29 = vector.multi_reduction <add>, %28, %cst_17 [0] : vector<8x256xf32> to vector<256xf32>
    %30 = vector.shape_cast %29 : vector<256xf32> to vector<1x256xf32>
    %cst_18 = arith.constant 1.250000e-01 : f32
    %31 = vector.broadcast %cst_18 : f32 to vector<1x256xf32>
    %32 = arith.mulf %27, %31 : vector<1x256xf32>
    %cst_19 = arith.constant 1.250000e-01 : f32
    %33 = vector.broadcast %cst_19 : f32 to vector<1x256xf32>
    %34 = arith.mulf %30, %33 : vector<1x256xf32>
    %35 = arith.mulf %32, %32 : vector<1x256xf32>
    %36 = arith.subf %34, %35 : vector<1x256xf32>
    %37 = vector.broadcast %32 : vector<1x256xf32> to vector<8x256xf32>
    %38 = arith.subf %25, %37 : vector<8x256xf32>
    %cst_20 = arith.constant 8.000000e-01 : f32
    %39 = vector.broadcast %cst_20 : f32 to vector<1x256xf32>
    %40 = arith.addf %36, %39 : vector<1x256xf32>
    %41 = math.rsqrt %40 : vector<1x256xf32>
    %42 = vector.broadcast %41 : vector<1x256xf32> to vector<8x256xf32>
    %43 = arith.mulf %38, %42 : vector<8x256xf32>
    %44 = vector.broadcast %20 : vector<1x256xf32> to vector<8x256xf32>
    %45 = arith.mulf %43, %44 : vector<8x256xf32>
    %46 = vector.broadcast %21 : vector<1x256xf32> to vector<8x256xf32>
    %47 = arith.addf %45, %46 : vector<8x256xf32>
    %cst_21 = arith.constant 0.000000e+00 : f32
    %48 = vector.broadcast %cst_21 : f32 to vector<8x256xf32>
    %49 = arith.cmpf ogt, %47, %48 : vector<8x256xf32>
    %cst_22 = arith.constant 2.000000e-01 : f32
    %50 = vector.broadcast %cst_22 : f32 to vector<8x256xf32>
    %51 = arith.mulf %50, %47 : vector<8x256xf32>
    %52 = arith.select %49, %47, %51 : vector<8x256xi1>, vector<8x256xf32>
    %c0_i32_23 = arith.constant 0 : i32
    %53 = tpu.memref_slice %arg21[%c0_i32_23] : memref<3x!tpu.dma_semaphore, #tpu.memory_space<semaphore_mem>> -> memref<1x!tpu.dma_semaphore, #tpu.memory_space<semaphore_mem>>
    %54 = tpu.memref_squeeze %53 : memref<1x!tpu.dma_semaphore, #tpu.memory_space<semaphore_mem>> -> memref<!tpu.dma_semaphore, #tpu.memory_space<semaphore_mem>>
    tpu.wait_dma2 semaphore(%54 : memref<!tpu.dma_semaphore, #tpu.memory_space<semaphore_mem>>) src(%arg7 : memref<256x512xbf16, #tpu.memory_space<any>>) dst(%arg18 : memref<256x512xbf16, #tpu.memory_space<vmem>>)
    %c0_24 = arith.constant 0 : index
    %c0_25 = arith.constant 0 : index
    %55 = vector.load %arg18[%c0_24, %c0_25] : memref<256x512xbf16, #tpu.memory_space<vmem>>, vector<256x512xbf16>
    %c0_26 = arith.constant 0 : index
    %c0_27 = arith.constant 0 : index
    %56 = vector.load %arg8[%c0_26, %c0_27] : memref<1x512xf32, #tpu.memory_space<vmem>>, vector<1x512xf32>
    %c0_28 = arith.constant 0 : index
    %c0_29 = arith.constant 0 : index
    %57 = vector.load %arg9[%c0_28, %c0_29] : memref<1x512xf32, #tpu.memory_space<vmem>>, vector<1x512xf32>
    %c0_30 = arith.constant 0 : index
    %c0_31 = arith.constant 0 : index
    %58 = vector.load %arg10[%c0_30, %c0_31] : memref<1x512xf32, #tpu.memory_space<vmem>>, vector<1x512xf32>
    %59 = arith.truncf %52 : vector<8x256xf32> to vector<8x256xbf16>
    %cst_32 = arith.constant dense<0.000000e+00> : vector<8x512xf32>
    %60 = tpu.matmul %59, %55, %cst_32 {dimension_numbers = #tpu.dot_dimension_numbers<[1], [0], [0], [1], [0, 0, 1, 1], [], []>} : vector<8x256xbf16>, vector<256x512xbf16>, vector<8x512xf32> -> vector<8x512xf32>
    %61 = vector.broadcast %56 : vector<1x512xf32> to vector<8x512xf32>
    %62 = arith.addf %60, %61 : vector<8x512xf32>
    %cst_33 = arith.constant dense<0.000000e+00> : vector<512xf32>
    %63 = vector.multi_reduction <add>, %62, %cst_33 [0] : vector<8x512xf32> to vector<512xf32>
    %64 = vector.shape_cast %63 : vector<512xf32> to vector<1x512xf32>
    %65 = arith.mulf %62, %62 : vector<8x512xf32>
    %cst_34 = arith.constant dense<0.000000e+00> : vector<512xf32>
    %66 = vector.multi_reduction <add>, %65, %cst_34 [0] : vector<8x512xf32> to vector<512xf32>
    %67 = vector.shape_cast %66 : vector<512xf32> to vector<1x512xf32>
    %cst_35 = arith.constant 1.250000e-01 : f32
    %68 = vector.broadcast %cst_35 : f32 to vector<1x512xf32>
    %69 = arith.mulf %64, %68 : vector<1x512xf32>
    %cst_36 = arith.constant 1.250000e-01 : f32
    %70 = vector.broadcast %cst_36 : f32 to vector<1x512xf32>
    %71 = arith.mulf %67, %70 : vector<1x512xf32>
    %72 = arith.mulf %69, %69 : vector<1x512xf32>
    %73 = arith.subf %71, %72 : vector<1x512xf32>
    %74 = vector.broadcast %69 : vector<1x512xf32> to vector<8x512xf32>
    %75 = arith.subf %62, %74 : vector<8x512xf32>
    %cst_37 = arith.constant 8.000000e-01 : f32
    %76 = vector.broadcast %cst_37 : f32 to vector<1x512xf32>
    %77 = arith.addf %73, %76 : vector<1x512xf32>
    %78 = math.rsqrt %77 : vector<1x512xf32>
    %79 = vector.broadcast %78 : vector<1x512xf32> to vector<8x512xf32>
    %80 = arith.mulf %75, %79 : vector<8x512xf32>
    %81 = vector.broadcast %57 : vector<1x512xf32> to vector<8x512xf32>
    %82 = arith.mulf %80, %81 : vector<8x512xf32>
    %83 = vector.broadcast %58 : vector<1x512xf32> to vector<8x512xf32>
    %84 = arith.addf %82, %83 : vector<8x512xf32>
    %cst_38 = arith.constant 0.000000e+00 : f32
    %85 = vector.broadcast %cst_38 : f32 to vector<8x512xf32>
    %86 = arith.cmpf ogt, %84, %85 : vector<8x512xf32>
    %cst_39 = arith.constant 2.000000e-01 : f32
    %87 = vector.broadcast %cst_39 : f32 to vector<8x512xf32>
    %88 = arith.mulf %87, %84 : vector<8x512xf32>
    %89 = arith.select %86, %84, %88 : vector<8x512xi1>, vector<8x512xf32>
    %c1_i32_40 = arith.constant 1 : i32
    %90 = tpu.memref_slice %arg21[%c1_i32_40] : memref<3x!tpu.dma_semaphore, #tpu.memory_space<semaphore_mem>> -> memref<1x!tpu.dma_semaphore, #tpu.memory_space<semaphore_mem>>
    %91 = tpu.memref_squeeze %90 : memref<1x!tpu.dma_semaphore, #tpu.memory_space<semaphore_mem>> -> memref<!tpu.dma_semaphore, #tpu.memory_space<semaphore_mem>>
    tpu.wait_dma2 semaphore(%91 : memref<!tpu.dma_semaphore, #tpu.memory_space<semaphore_mem>>) src(%arg11 : memref<512x1024xbf16, #tpu.memory_space<any>>) dst(%arg19 : memref<512x1024xbf16, #tpu.memory_space<vmem>>)
    %c0_41 = arith.constant 0 : index
    %c0_42 = arith.constant 0 : index
    %92 = vector.load %arg19[%c0_41, %c0_42] : memref<512x1024xbf16, #tpu.memory_space<vmem>>, vector<512x1024xbf16>
    %c0_43 = arith.constant 0 : index
    %c0_44 = arith.constant 0 : index
    %93 = vector.load %arg12[%c0_43, %c0_44] : memref<1x1024xf32, #tpu.memory_space<vmem>>, vector<1x1024xf32>
    %c0_45 = arith.constant 0 : index
    %c0_46 = arith.constant 0 : index
    %94 = vector.load %arg13[%c0_45, %c0_46] : memref<1x1024xf32, #tpu.memory_space<vmem>>, vector<1x1024xf32>
    %c0_47 = arith.constant 0 : index
    %c0_48 = arith.constant 0 : index
    %95 = vector.load %arg14[%c0_47, %c0_48] : memref<1x1024xf32, #tpu.memory_space<vmem>>, vector<1x1024xf32>
    %96 = arith.truncf %89 : vector<8x512xf32> to vector<8x512xbf16>
    %cst_49 = arith.constant dense<0.000000e+00> : vector<8x1024xf32>
    %97 = tpu.matmul %96, %92, %cst_49 {dimension_numbers = #tpu.dot_dimension_numbers<[1], [0], [0], [1], [0, 0, 1, 1], [], []>} : vector<8x512xbf16>, vector<512x1024xbf16>, vector<8x1024xf32> -> vector<8x1024xf32>
    %98 = vector.broadcast %93 : vector<1x1024xf32> to vector<8x1024xf32>
    %99 = arith.addf %97, %98 : vector<8x1024xf32>
    %cst_50 = arith.constant dense<0.000000e+00> : vector<1024xf32>
    %100 = vector.multi_reduction <add>, %99, %cst_50 [0] : vector<8x1024xf32> to vector<1024xf32>
    %101 = vector.shape_cast %100 : vector<1024xf32> to vector<1x1024xf32>
    %102 = arith.mulf %99, %99 : vector<8x1024xf32>
    %cst_51 = arith.constant dense<0.000000e+00> : vector<1024xf32>
    %103 = vector.multi_reduction <add>, %102, %cst_51 [0] : vector<8x1024xf32> to vector<1024xf32>
    %104 = vector.shape_cast %103 : vector<1024xf32> to vector<1x1024xf32>
    %cst_52 = arith.constant 1.250000e-01 : f32
    %105 = vector.broadcast %cst_52 : f32 to vector<1x1024xf32>
    %106 = arith.mulf %101, %105 : vector<1x1024xf32>
    %cst_53 = arith.constant 1.250000e-01 : f32
    %107 = vector.broadcast %cst_53 : f32 to vector<1x1024xf32>
    %108 = arith.mulf %104, %107 : vector<1x1024xf32>
    %109 = arith.mulf %106, %106 : vector<1x1024xf32>
    %110 = arith.subf %108, %109 : vector<1x1024xf32>
    %111 = vector.broadcast %106 : vector<1x1024xf32> to vector<8x1024xf32>
    %112 = arith.subf %99, %111 : vector<8x1024xf32>
    %cst_54 = arith.constant 8.000000e-01 : f32
    %113 = vector.broadcast %cst_54 : f32 to vector<1x1024xf32>
    %114 = arith.addf %110, %113 : vector<1x1024xf32>
    %115 = math.rsqrt %114 : vector<1x1024xf32>
    %116 = vector.broadcast %115 : vector<1x1024xf32> to vector<8x1024xf32>
    %117 = arith.mulf %112, %116 : vector<8x1024xf32>
    %118 = vector.broadcast %94 : vector<1x1024xf32> to vector<8x1024xf32>
    %119 = arith.mulf %117, %118 : vector<8x1024xf32>
    %120 = vector.broadcast %95 : vector<1x1024xf32> to vector<8x1024xf32>
    %121 = arith.addf %119, %120 : vector<8x1024xf32>
    %cst_55 = arith.constant 0.000000e+00 : f32
    %122 = vector.broadcast %cst_55 : f32 to vector<8x1024xf32>
    %123 = arith.cmpf ogt, %121, %122 : vector<8x1024xf32>
    %cst_56 = arith.constant 2.000000e-01 : f32
    %124 = vector.broadcast %cst_56 : f32 to vector<8x1024xf32>
    %125 = arith.mulf %124, %121 : vector<8x1024xf32>
    %126 = arith.select %123, %121, %125 : vector<8x1024xi1>, vector<8x1024xf32>
    %c2_i32_57 = arith.constant 2 : i32
    %127 = tpu.memref_slice %arg21[%c2_i32_57] : memref<3x!tpu.dma_semaphore, #tpu.memory_space<semaphore_mem>> -> memref<1x!tpu.dma_semaphore, #tpu.memory_space<semaphore_mem>>
    %128 = tpu.memref_squeeze %127 : memref<1x!tpu.dma_semaphore, #tpu.memory_space<semaphore_mem>> -> memref<!tpu.dma_semaphore, #tpu.memory_space<semaphore_mem>>
    tpu.wait_dma2 semaphore(%128 : memref<!tpu.dma_semaphore, #tpu.memory_space<semaphore_mem>>) src(%arg15 : memref<1024x256xbf16, #tpu.memory_space<any>>) dst(%arg20 : memref<1024x256xbf16, #tpu.memory_space<vmem>>)
    %c0_58 = arith.constant 0 : index
    %c0_59 = arith.constant 0 : index
    %129 = vector.load %arg20[%c0_58, %c0_59] : memref<1024x256xbf16, #tpu.memory_space<vmem>>, vector<1024x256xbf16>
    %130 = arith.truncf %126 : vector<8x1024xf32> to vector<8x1024xbf16>
    %cst_60 = arith.constant dense<0.000000e+00> : vector<8x256xf32>
    %131 = tpu.matmul %130, %129, %cst_60 {dimension_numbers = #tpu.dot_dimension_numbers<[1], [0], [0], [1], [0, 0, 1, 1], [], []>} : vector<8x1024xbf16>, vector<1024x256xbf16>, vector<8x256xf32> -> vector<8x256xf32>
    %c0_61 = arith.constant 0 : index
    %c0_62 = arith.constant 0 : index
    %132 = vector.load %arg16[%c0_61, %c0_62] : memref<1x256xf32, #tpu.memory_space<vmem>>, vector<1x256xf32>
    %133 = vector.broadcast %132 : vector<1x256xf32> to vector<8x256xf32>
    %134 = arith.addf %131, %133 : vector<8x256xf32>
    %cst_63 = arith.constant 0.000000e+00 : f32
    %135 = vector.broadcast %cst_63 : f32 to vector<8x256xf32>
    %136 = arith.cmpf ogt, %134, %135 : vector<8x256xf32>
    %137 = arith.extui %136 : vector<8x256xi1> to vector<8x256xi32>
    %138 = arith.sitofp %137 : vector<8x256xi32> to vector<8x256xf32>
    %139 = arith.truncf %138 : vector<8x256xf32> to vector<8x256xbf16>
    %c0_64 = arith.constant 0 : index
    %c0_65 = arith.constant 0 : index
    %140 = vector.load %arg17[%c0_64, %c0_65] : memref<8x256xbf16, #tpu.memory_space<vmem>>, vector<8x256xbf16>
    tpu.vector_store %arg17[%c0_64, %c0_65], %139 {strides = array<i32>} : memref<8x256xbf16, #tpu.memory_space<vmem>>, vector<8x256xbf16>,
    return
  }
}

</mosaic_0001>

<bundles_post_ra>
// kernel: generator_fc_forward.1
= control target key start
LH: loop header
LB: loop body
LE: loop exit
PB: predicated region body
PF: predicated region fallthrough
CT: control target
= control target key end

     0   :  { %s3067_s0 = inlined_call_operand.hbm [shape: f32[8,32], index: 0, kind: input, shape index: {}]   ;;  %s3068_s1 = inlined_call_operand.vmem [shape: bf16[32,128], index: 1, kind: input, shape index: {}]   ;;  %s3069_s2 = inlined_call_operand.vmem [shape: f32[1,128], index: 2, kind: input, shape index: {}]   ;;  %s3070_s3 = inlined_call_operand.hbm [shape: bf16[128,256], index: 3, kind: input, shape index: {}]   ;;  %s3071_s4 = inlined_call_operand.hbm [shape: f32[1,256], index: 4, kind: input, shape index: {}]   ;;  %s3072_s5 = inlined_call_operand.hbm [shape: f32[1,256], index: 5, kind: input, shape index: {}]   ;;  %s3073_s6 = inlined_call_operand.hbm [shape: f32[1,256], index: 6, kind: input, shape index: {}]   ;;  %s3074_s7 = inlined_call_operand.hbm [shape: bf16[256,512], index: 7, kind: input, shape index: {}]   ;;  %s3075_s8 = inlined_call_operand.hbm [shape: f32[1,512], index: 8, kind: input, shape index: {}]   ;;  %s3076_s9 = inlined_call_operand.vmem [shape: f32[1,512], index: 9, kind: input, shape index: {}]   ;;  %s3077_s10 = inlined_call_operand.hbm [shape: f32[1,512], index: 10, kind: input, shape index: {}]   ;;  %s3078_s11 = inlined_call_operand.hbm [shape: bf16[512,1024], index: 11, kind: input, shape index: {}]   ;;  %s3079_s12 = inlined_call_operand.vmem [shape: f32[1,1024], index: 12, kind: input, shape index: {}]   ;;  %s3080_s13 = inlined_call_operand.vmem [shape: f32[1,1024], index: 13, kind: input, shape index: {}]   ;;  %s3081_s14 = inlined_call_operand.hbm [shape: f32[1,1024], index: 14, kind: input, shape index: {}]   ;;  %s3082_s15 = inlined_call_operand.hbm [shape: bf16[1024,256], index: 15, kind: input, shape index: {}]   ;;  %s3083_s16 = inlined_call_operand.hbm [shape: f32[1,256], index: 16, kind: input, shape index: {}]   ;;  %s3084_s17 = inlined_call_operand.vmem [shape: bf16[8,256], index: 17, kind: output, shape index: {}]  }
   0x1   :  { %3087 = sst [smem:[#allocation34_spill]] %s3067_s0 }
   0x2   :  { %3088 = sst [smem:[#allocation35_spill]] %s3068_s1 }
   0x3   :  { %3089 = sst [smem:[#allocation36_spill]] %s3084_s17 }
   0x4   :  { %22 = vsyncpa [#allocation7], 0 }
   0x5   :  { %23 = vsyncpa [#allocation9], 0 }
   0x6   :  { %24 = vsyncpa [#allocation12], 0 }
   0x7   :  { %25 = vsyncpa [#allocation15], 0 }
   0x8   :  { %26 = vsyncpa [#allocation18], 0  ;;  %s2545_s24 = smov [#allocation8]   ;;  %s2331_s28 = scalar_lea.hbm %s3070_s3, 2048 }
   0x9   :  { %s46_s25 = sshll.u32 %s2545_s24, 4  ;;  %p2332_p0 = scmp.ne.s32.totalorder %s3070_s3, %s2331_s28  ;;  %s47_s25 = int_to_ptr.vmem [resolvable:$true] %s46_s25 }
   0xa   :  { %p2335_p1 = scmp.lt.u32.totalorder %s2331_s28, %s3070_s3 }
   0xc   :  { %p2337_p2 = pnand %p2335_p1, %p2332_p0 }
   0xe   :  { %2340 = shalt.err (!%p2337_p2)
}
   0xf   :  { %s2341_s19 = scalar_lea.vmem %s47_s25, 2048  ;;  %p2346_p4 = scmp.lt.s32.totalorder %s47_s25, %s47_s25 }
  0x10   :  { %p2342_p3 = scmp.ne.s32.totalorder %s47_s25, %s2341_s19  ;;  %p2347_p5 = scmp.lt.s32.totalorder %s2341_s19, %s2341_s19 }
  0x12   :  { %p2348_p6 = por %p2347_p5, %p2346_p4 }
  0x14   :  { %p2349_p7 = pnand %p2348_p6, %p2342_p3 }
  0x16   :  { %2352 = shalt.err (!%p2349_p7)
}
  0x17   :  { %s2546_s1 = smov 128   ;;  %s2547_s20 = smov 8  }
  0x18   :  { %52 = dma.hbm_to_vmem [thread:$0]  %s3070_s3, 2048, %s47_s25, [#allocation9], %s2546_s1, %s2546_s1, %s2547_s20  }
  0x19   :  { %s2548_s23 = smov [#allocation11]   ;;  %s2549_s26 = smov [#allocation14]  }
  0x1a   :  { %s69_s24 = sshll.u32 %s2548_s23, 4  ;;  %s89_s27 = sshll.u32 %s2549_s26, 4  ;;  %s70_s24 = int_to_ptr.vmem [resolvable:$true] %s69_s24  ;;  %s90_s27 = int_to_ptr.vmem [resolvable:$true] %s89_s27 }
  0x1b   :  { %s2353_s0 = scalar_lea.hbm %s3072_s5, 32 }
  0x1c   :  { %p2354_p8 = scmp.ne.s32.totalorder %s3072_s5, %s2353_s0  ;;  %p2357_p9 = scmp.lt.u32.totalorder %s2353_s0, %s3072_s5 }
  0x1e   :  { %p2359_p10 = pnand %p2357_p9, %p2354_p8 }
  0x20   :  { %2362 = shalt.err (!%p2359_p10)
}
  0x21   :  { %s2363_s3 = scalar_lea.vmem %s70_s24, 32  ;;  %p2368_p12 = scmp.lt.s32.totalorder %s70_s24, %s70_s24 }
  0x22   :  { %p2364_p11 = scmp.ne.s32.totalorder %s70_s24, %s2363_s3  ;;  %p2369_p13 = scmp.lt.s32.totalorder %s2363_s3, %s2363_s3 }
  0x24   :  { %p2370_p0 = por %p2369_p13, %p2368_p12 }
  0x26   :  { %p2371_p1 = pnand %p2370_p0, %p2364_p11 }
  0x28   :  { %2374 = shalt.err (!%p2371_p1)
}
  0x29   :  { %72 = dma.hbm_to_vmem [thread:$0]  %s3072_s5, 32, %s70_s24, [#allocation12]  }
  0x2a   :  { %s2375_s26 = scalar_lea.hbm %s3075_s8, 64 }
  0x2b   :  { %p2376_p2 = scmp.ne.s32.totalorder %s3075_s8, %s2375_s26  ;;  %p2379_p3 = scmp.lt.u32.totalorder %s2375_s26, %s3075_s8 }
  0x2d   :  { %p2381_p4 = pnand %p2379_p3, %p2376_p2 }
  0x2f   :  { %2384 = shalt.err (!%p2381_p4)
}
  0x30   :  { %s2385_s30 = scalar_lea.vmem %s90_s27, 64  ;;  %p2390_p6 = scmp.lt.s32.totalorder %s90_s27, %s90_s27 }
  0x31   :  { %p2386_p5 = scmp.ne.s32.totalorder %s90_s27, %s2385_s30  ;;  %p2391_p7 = scmp.lt.s32.totalorder %s2385_s30, %s2385_s30 }
  0x33   :  { %p2392_p8 = por %p2391_p7, %p2390_p6 }
  0x35   :  { %p2393_p9 = pnand %p2392_p8, %p2386_p5 }
  0x37   :  { %2396 = shalt.err (!%p2393_p9)
}
  0x38   :  { %92 = dma.hbm_to_vmem [thread:$0]  %s3075_s8, 64, %s90_s27, [#allocation15]  }
  0x39   :  { %s2550_s18 = smov [#allocation17]   ;;  %s2551_s3 = smov [#allocation6]  }
  0x3a   :  { %s115_s19 = sshll.u32 %s2550_s18, 4  ;;  %s33_s25 = sshll.u32 %s2551_s3, 4  ;;  %s116_s19 = int_to_ptr.vmem [resolvable:$true] %s115_s19  ;;  %s34_s25 = int_to_ptr.vmem [resolvable:$true] %s33_s25 }
  0x3b   :  { %s2397_s23 = scalar_lea.hbm %s3081_s14, 128 }
  0x3c   :  { %p2398_p10 = scmp.ne.s32.totalorder %s3081_s14, %s2397_s23  ;;  %p2401_p11 = scmp.lt.u32.totalorder %s2397_s23, %s3081_s14 }
  0x3e   :  { %p2403_p12 = pnand %p2401_p11, %p2398_p10 }
  0x40   :  { %2406 = shalt.err (!%p2403_p12)
}
  0x41   :  { %s2407_s8 = scalar_lea.vmem %s116_s19, 128  ;;  %p2412_p0 = scmp.lt.s32.totalorder %s116_s19, %s116_s19 }
  0x42   :  { %p2408_p13 = scmp.ne.s32.totalorder %s116_s19, %s2407_s8  ;;  %p2413_p1 = scmp.lt.s32.totalorder %s2407_s8, %s2407_s8 }
  0x44   :  { %p2414_p2 = por %p2413_p1, %p2412_p0 }
  0x46   :  { %p2415_p3 = pnand %p2414_p2, %p2408_p13 }
  0x48   :  { %2418 = shalt.err (!%p2415_p3)
}
  0x49   :  { %118 = dma.hbm_to_vmem [thread:$0]  %s3081_s14, 128, %s116_s19, [#allocation18]  }
  0x4a   :  { %s3090_s24 = sld [smem:[#allocation34_spill]] }
  0x50   :  { %s2419_s18 = scalar_lea.hbm %s3090_s24, 128 }
  0x51   :  { %p2420_p4 = scmp.ne.s32.totalorder %s3090_s24, %s2419_s18  ;;  %p2423_p5 = scmp.lt.u32.totalorder %s2419_s18, %s3090_s24 }
  0x53   :  { %p2425_p6 = pnand %p2423_p5, %p2420_p4 }
  0x55   :  { %2428 = shalt.err (!%p2425_p6)
}
  0x56   :  { %s2429_s26 = scalar_lea.vmem %s34_s25, 128  ;;  %p2434_p8 = scmp.lt.s32.totalorder %s34_s25, %s34_s25 }
  0x57   :  { %p2430_p7 = scmp.ne.s32.totalorder %s34_s25, %s2429_s26  ;;  %p2435_p9 = scmp.lt.s32.totalorder %s2429_s26, %s2429_s26 }
  0x59   :  { %p2436_p10 = por %p2435_p9, %p2434_p8 }
  0x5b   :  { %p2437_p11 = pnand %p2436_p10, %p2430_p7 }
  0x5d   :  { %2440 = shalt.err (!%p2437_p11)
}
  0x5e   :  { %36 = dma.hbm_to_vmem [thread:$0]  %s3090_s24, 128, %s34_s25, [#allocation7]  }
  0x5f   :  { %s2552_s17 = smov [#allocation10]   ;;  %s2553_s29 = smov [#allocation13]  }
  0x60   :  { %s59_s28 = sshll.u32 %s2552_s17, 4  ;;  %s79_s8 = sshll.u32 %s2553_s29, 4  ;;  %s60_s28 = int_to_ptr.vmem [resolvable:$true] %s59_s28  ;;  %s80_s8 = int_to_ptr.vmem [resolvable:$true] %s79_s8 }
  0x61   :  { %s2441_s30 = scalar_lea.hbm %s3071_s4, 32 }
  0x62   :  { %p2442_p12 = scmp.ne.s32.totalorder %s3071_s4, %s2441_s30  ;;  %p2445_p13 = scmp.lt.u32.totalorder %s2441_s30, %s3071_s4 }
  0x64   :  { %p2447_p0 = pnand %p2445_p13, %p2442_p12 }
  0x66   :  { %2450 = shalt.err (!%p2447_p0)
}
  0x67   :  { %s2451_s25 = scalar_lea.vmem %s60_s28, 32  ;;  %p2456_p2 = scmp.lt.s32.totalorder %s60_s28, %s60_s28 }
  0x68   :  { %p2452_p1 = scmp.ne.s32.totalorder %s60_s28, %s2451_s25  ;;  %p2457_p3 = scmp.lt.s32.totalorder %s2451_s25, %s2451_s25 }
  0x6a   :  { %p2458_p4 = por %p2457_p3, %p2456_p2 }
  0x6c   :  { %p2459_p5 = pnand %p2458_p4, %p2452_p1 }
  0x6e   :  { %2462 = shalt.err (!%p2459_p5)
}
  0x6f   :  { %62 = dma.hbm_to_vmem [thread:$0]  %s3071_s4, 32, %s60_s28, [#allocation9]  }
  0x70   :  { %s2463_s14 = scalar_lea.hbm %s3073_s6, 32 }
  0x71   :  { %p2464_p6 = scmp.ne.s32.totalorder %s3073_s6, %s2463_s14  ;;  %p2467_p7 = scmp.lt.u32.totalorder %s2463_s14, %s3073_s6 }
  0x73   :  { %p2469_p8 = pnand %p2467_p7, %p2464_p6 }
  0x75   :  { %2472 = shalt.err (!%p2469_p8)
}
  0x76   :  { %s2473_s0 = scalar_lea.vmem %s80_s8, 32  ;;  %p2478_p10 = scmp.lt.s32.totalorder %s80_s8, %s80_s8 }
  0x77   :  { %p2474_p9 = scmp.ne.s32.totalorder %s80_s8, %s2473_s0  ;;  %p2479_p11 = scmp.lt.s32.totalorder %s2473_s0, %s2473_s0 }
  0x79   :  { %p2480_p12 = por %p2479_p11, %p2478_p10 }
  0x7b   :  { %p2481_p13 = pnand %p2480_p12, %p2474_p9 }
  0x7d   :  { %2484 = shalt.err (!%p2481_p13)
}
  0x7e   :  { %82 = dma.hbm_to_vmem [thread:$0]  %s3073_s6, 32, %s80_s8, [#allocation12]  }
  0x7f   :  { %s2554_s30 = smov [#allocation16]   ;;  %s2555_s18 = smov [#allocation19]  }
  0x80   :  { %s101_s5 = sshll.u32 %s2554_s30, 4  ;;  %s125_s3 = sshll.u32 %s2555_s18, 4  ;;  %s102_s5 = int_to_ptr.vmem [resolvable:$true] %s101_s5  ;;  %s126_s3 = int_to_ptr.vmem [resolvable:$true] %s125_s3 }
  0x81   :  { %s2485_s24 = scalar_lea.hbm %s3077_s10, 64 }
  0x82   :  { %p2486_p0 = scmp.ne.s32.totalorder %s3077_s10, %s2485_s24  ;;  %p2489_p1 = scmp.lt.u32.totalorder %s2485_s24, %s3077_s10 }
  0x84   :  { %p2491_p2 = pnand %p2489_p1, %p2486_p0 }
  0x86   :  { %2494 = shalt.err (!%p2491_p2)
}
  0x87   :  { %s2495_s6 = scalar_lea.vmem %s102_s5, 64  ;;  %p2500_p4 = scmp.lt.s32.totalorder %s102_s5, %s102_s5 }
  0x88   :  { %p2496_p3 = scmp.ne.s32.totalorder %s102_s5, %s2495_s6  ;;  %p2501_p5 = scmp.lt.s32.totalorder %s2495_s6, %s2495_s6 }
  0x8a   :  { %p2502_p6 = por %p2501_p5, %p2500_p4 }
  0x8c   :  { %p2503_p7 = pnand %p2502_p6, %p2496_p3 }
  0x8e   :  { %2506 = shalt.err (!%p2503_p7)
}
  0x8f   :  { %104 = dma.hbm_to_vmem [thread:$0]  %s3077_s10, 64, %s102_s5, [#allocation15]  }
  0x90   :  { %s2507_s27 = scalar_lea.hbm %s3083_s16, 32 }
  0x91   :  { %p2508_p8 = scmp.ne.s32.totalorder %s3083_s16, %s2507_s27  ;;  %p2511_p9 = scmp.lt.u32.totalorder %s2507_s27, %s3083_s16 }
  0x93   :  { %p2513_p10 = pnand %p2511_p9, %p2508_p8 }
  0x95   :  { %2516 = shalt.err (!%p2513_p10)
}
  0x96   :  { %s2517_s18 = scalar_lea.vmem %s126_s3, 32  ;;  %p2522_p12 = scmp.lt.s32.totalorder %s126_s3, %s126_s3 }
  0x97   :  { %p2518_p11 = scmp.ne.s32.totalorder %s126_s3, %s2517_s18  ;;  %p2523_p13 = scmp.lt.s32.totalorder %s2517_s18, %s2517_s18 }
  0x99   :  { %p2524_p0 = por %p2523_p13, %p2522_p12 }
  0x9b   :  { %p2525_p1 = pnand %p2524_p0, %p2518_p11 }
  0x9d   :  { %2528 = shalt.err (!%p2525_p1)
}
  0x9e   :  { %128 = dma.hbm_to_vmem [thread:$0]  %s3083_s16, 32, %s126_s3, [#allocation18]  }
  0x9f   :  { %2529 = dma.done.wait [#allocation7], 128  }
  0xa0   :  { %2530 = vsyncadd [#allocation7], 4294967168 }
  0xa1   :  { %2531 = dma.done.wait [#allocation9], 2080  }
  0xa2   :  { %2532 = vsyncadd [#allocation9], 4294965216 }
  0xa3   :  { %2533 = dma.done.wait [#allocation12], 64  }
  0xa4   :  { %2534 = vsyncadd [#allocation12], 4294967232 }
  0xa5   :  { %2535 = dma.done.wait [#allocation15], 128  }
  0xa6   :  { %2536 = vsyncadd [#allocation15], 4294967168 }
  0xa7   :  { %2537 = dma.done.wait [#allocation18], 160  }
  0xa8   :  { %2538 = vsyncadd [#allocation18], 4294967136  ;;  %s161_s21 = sld [smem:[#allocation0]]   ;;  %s2556_s25 = smov 64   ;;  %v2557_v0 = vmov 0.0   ;;  %vm2558_vm0 = vmmov 0   ;;  %v355_v31 = vlaneseq }
  0xa9   :  { %179 = sst [smem:[#allocation21 + $0x3]] %s2556_s25  ;;  %2204 = vmatprep.subr.bf16.mxu0 %v2557_v0  ;;  %2208 = vmatprep.mubr.msk.bf16.mxu0 %vm2558_vm0, %v2557_v0  ;;  %s2559_s16 = smov 256   ;;  %vm287_vm1 = vcmask 261120   ;;  %v2573_v21 = vmov 0  }
  0xaa   :  { %181 = sst [smem:[#allocation21 + $0x4]] %s2546_s1  ;;  %s2560_s3 = smov [#allocation2]   ;;  %477 = vmatprep.mubr.bf16.mxu1 %v2573_v21  ;;  %v2823_v32 = vshrl.u32 %v355_v31, 7 }
  0xab   :  { %185 = sst [smem:[#allocation21 + $0x6]] %s2559_s16  ;;  %s169_s24 = sshll.u32 %s2560_s3, 4  ;;  %s170_s24 = int_to_ptr.vmem [resolvable:$true] %s169_s24 }
  0xac   :  { %187 = sst [smem:[#allocation21 + $0x7]] %s2556_s25  ;;  %s2561_s22 = smov 512   ;;  %v2826_v33 = vsub.s32 0, %v2823_v32  ;;  %v2829_v35 = vsub.s32 1, %v2823_v32 }
  0xad   :  { %173 = sst [smem:[#allocation21]] %s2561_s22  ;;  %s2562_s14 = smov 4  }
  0xae   :  { %s2168_s23 = sshll.u32 %s161_s21, 26  ;;  %175 = sst [smem:[#allocation21 + $0x1]] %s2561_s22 }
  0xaf   :  { %s2781_s26 = sadd.s32 134217728, %s2168_s23  ;;  %177 = sst [smem:[#allocation21 + $0x2]] %s2562_s14 }
  0xb0   :  { %s2563_s6 = smov 2   ;;  %189 = sst [smem:[#allocation21 + $0x8]] %s2562_s14 }
  0xb1   :  { %183 = sst [smem:[#allocation21 + $0x5]] %s2563_s6  ;;  %s2564_s8 = smov [#allocation5]  }
  0xb2   :  { %s2565_s19 = smov [#allocation20]   ;;  %s2566_s27 = smov 1024  }
  0xb3   :  { %191 = dma.general %s3074_s7, 8192, %s170_s24, %s2564_s8, %s2565_s19, [#allocation21], %s2781_s26, 0  }
  0xb4   :  { %212 = sst [smem:[#allocation23 + $0x2]] %s2547_s20  ;;  %s2567_s0 = smov [#allocation3]  }
  0xb5   :  { %208 = sst [smem:[#allocation23]] %s2566_s27  ;;  %s204_s4 = sshll.u32 %s2567_s0, 4  ;;  %s205_s4 = int_to_ptr.vmem [resolvable:$true] %s204_s4 }
  0xb6   :  { %210 = sst [smem:[#allocation23 + $0x1]] %s2566_s27  ;;  %s2568_s7 = smov [#allocation5 + $0x1]  }
  0xb7   :  { %214 = sst [smem:[#allocation23 + $0x3]] %s2556_s25  ;;  %s2569_s28 = smov [#allocation22]  }
  0xb8   :  { %216 = sst [smem:[#allocation23 + $0x4]] %s2546_s1  ;;  %s2570_s18 = smov [#allocation4]  }
  0xb9   :  { %218 = sst [smem:[#allocation23 + $0x5]] %s2563_s6  ;;  %s239_s10 = sshll.u32 %s2570_s18, 4  ;;  %s240_s10 = int_to_ptr.vmem [resolvable:$true] %s239_s10 }
  0xba   :  { %220 = sst [smem:[#allocation23 + $0x6]] %s2561_s22  ;;  %s2572_s5 = smov [#allocation24]  }
  0xbb   :  { %222 = sst [smem:[#allocation23 + $0x7]] %s2556_s25 }
  0xbc   :  { %224 = sst [smem:[#allocation23 + $0x8]] %s2562_s14 }
  0xbd   :  { %226 = dma.general %s3078_s11, 32768, %s205_s4, %s2568_s7, %s2569_s28, [#allocation23], %s2781_s26, 0  }
  0xbe   :  { %243 = sst [smem:[#allocation25]] %s2559_s16  ;;  %s2571_s11 = smov [#allocation5 + $0x2]  }
  0xbf   :  { %245 = sst [smem:[#allocation25 + $0x1]] %s2559_s16 }
  0xc0   :  { %247 = sst [smem:[#allocation25 + $0x2]] %s2563_s6 }
  0xc1   :  { %249 = sst [smem:[#allocation25 + $0x3]] %s2556_s25 }
  0xc2   :  { %251 = sst [smem:[#allocation25 + $0x4]] %s2546_s1 }
  0xc3   :  { %253 = sst [smem:[#allocation25 + $0x5]] %s2563_s6 }
  0xc4   :  { %255 = sst [smem:[#allocation25 + $0x6]] %s2546_s1 }
  0xc5   :  { %257 = sst [smem:[#allocation25 + $0x7]] %s2556_s25 }
  0xc6   :  { %259 = sst [smem:[#allocation25 + $0x8]] %s2562_s14 }
  0xc7   :  { %261 = dma.general %s3082_s15, 16384, %s240_s10, %s2571_s11, %s2572_s5, [#allocation25], %s2781_s26, 0  }
  0xc8   :  { %s3091_s22 = sld [smem:[#allocation35_spill]]  ;;  %v262_v3 = vld [vmem:[#allocation6] sm:$0xff]  ;;  %v2279_v4 = vld [vmem:[#allocation8 + $0x4] ss:$8 sps:$4 sm:$0xff]   ;;  %v2281_v5 = vld [vmem:[#allocation8] ss:$8 sps:$4 sm:$0xff]  }
  0xc9   :  { %v2282_v6 = vld [vmem:[#allocation8 + $0x14] ss:$8 sps:$4 sm:$0xff]   ;;  %v267_v7 = vpack.c.bf16 %v262_v3, %v262_v3  ;;  %445 = vmatprep.subr.bf16.mxu1 %v2279_v4  ;;  %v2284_v8 = vld [vmem:[#allocation8 + $0x10] ss:$8 sps:$4 sm:$0xff]   ;;  %v2285_v9 = vld [vmem:[#allocation8 + $0x24] ss:$8 sps:$4 sm:$0xff]  }
  0xca   :  { %446 = vmatpush1.bf16.msra.mxu1 %v2281_v5  ;;  %v2287_v10 = vld [vmem:[#allocation8 + $0x20] ss:$8 sps:$4 sm:$0xff]   ;;  %v2288_v11 = vld [vmem:[#allocation8 + $0x34] ss:$8 sps:$4 sm:$0xff]   ;;  %v2290_v12 = vld [vmem:[#allocation8 + $0x30] ss:$8 sps:$4 sm:$0xff]  }
  0xcb   :  { %447 = vmatprep.subr.bf16.mxu1 %v2282_v6  ;;  %v2291_v13 = vld [vmem:[#allocation8 + $0x44] ss:$8 sps:$4 sm:$0xff]   ;;  %v2293_v14 = vld [vmem:[#allocation8 + $0x40] ss:$8 sps:$4 sm:$0xff]   ;;  %v2294_v15 = vld [vmem:[#allocation8 + $0x54] ss:$8 sps:$4 sm:$0xff]  }
  0xcc   :  { %v2296_v16 = vld [vmem:[#allocation8 + $0x50] ss:$8 sps:$4 sm:$0xff]   ;;  %v2297_v17 = vld [vmem:[#allocation8 + $0x64] ss:$8 sps:$4 sm:$0xff]   ;;  %v2299_v18 = vld [vmem:[#allocation8 + $0x60] ss:$8 sps:$4 sm:$0xff]  }
  0xcd   :  { %v2300_v19 = vld [vmem:[#allocation8 + $0x74] ss:$8 sps:$4 sm:$0xff]   ;;  %v2302_v20 = vld [vmem:[#allocation8 + $0x70] ss:$8 sps:$4 sm:$0xff]   ;;  %v2174_v22 = vld [vmem:[%s3069_s2] ss:$0 sm:$0xff] }
  0xce   :  { %v2277_v1 = vld [vmem:[%s3091_s22] sm:$0xff]   ;;  %v2278_v2 = vld [vmem:[%s3091_s22 + $0x8] sm:$0xff]   ;;  %448 = vmatpush1.bf16.msra.mxu1 %v2284_v8 }
  0xcf   :  { %2205 = vmatpush3.bf16.msra.mxu0 %v2277_v1  ;;  %449 = vmatprep.subr.bf16.mxu1 %v2285_v9  ;;  %v350_v34 = vld [vmem:[#allocation10] sm:$0x3] }
  0xd0   :  { %2206 = vmatprep.subr.bf16.mxu0 %v2557_v0  ;;  %v358_v36 = vrot.slane %v350_v34, %v2826_v33  ;;  %v362_v37 = vrot.slane %v350_v34, %v2829_v35 }
  0xd2   :  { %450 = vmatpush1.bf16.msra.mxu1 %v2287_v10 }
  0xd3   :  { %2207 = vmatpush3.bf16.msra.mxu0 %v2278_v2  ;;  %451 = vmatprep.subr.bf16.mxu1 %v2288_v11 }
  0xd6   :  { %2209 = vmatmul.mubr.msk.bf16.vlgmr.msra.gmra.mrb[0].mxu0 %vm287_vm1, %v267_v7  ;;  %452 = vmatpush1.bf16.msra.mxu1 %v2290_v12 }
  0xd7   :  { %453 = vmatprep.subr.bf16.mxu1 %v2291_v13 }
  0xda   :  { %454 = vmatpush1.bf16.msra.mxu1 %v2293_v14 }
  0xdb   :  { %455 = vmatprep.subr.bf16.mxu1 %v2294_v15 }
  0xde   :  { %456 = vmatpush1.bf16.msra.mxu1 %v2296_v16 }
  0xdf   :  { %457 = vmatprep.subr.bf16.mxu1 %v2297_v17  ;;  %v351_v17 = vld [vmem:[#allocation11] sm:$0x3] }
  0xe2   :  { %458 = vmatpush1.bf16.msra.mxu1 %v2299_v18  ;;  %v352_v18 = vld [vmem:[#allocation13] sm:$0x3] }
  0xe3   :  { %459 = vmatprep.subr.bf16.mxu1 %v2300_v19 }
  0xe6   :  { %460 = vmatpush1.bf16.msra.mxu1 %v2302_v20  ;;  %v532_v20 = vrot.slane %v351_v17, %v2826_v33 }
 0x1a9   :  { %v325_v23 = vpop.f32.mrb[0].mxu0 }
 0x1aa   :  { %v326_v24 = vadd.f32 %v2174_v22, %v325_v23  ;;  %v2210_v25 = vpop.f32.mrb[1].mxu0  ;;  %v536_v23 = vrot.slane %v351_v17, %v2829_v35 }
 0x1ab   :  { %v328_v26 = vpop.f32.mrb[2].mxu0 }
 0x1ac   :  { %vm331_vm2 = vcmp.gt.f32.partialorder %v326_v24, 0.0  ;;  %v332_v27 = vmul.f32 0.2, %v326_v24  ;;  %v2211_v28 = vpop.f32.mrb[3].mxu0  ;;  %v545_v26 = vrot.slane %v352_v18, %v2826_v33 }
 0x1ad   :  { %v549_v28 = vrot.slane %v352_v18, %v2829_v35 }
 0x1ae   :  { %v333_v29 = vsel %vm331_vm2, %v326_v24, %v332_v27 }
 0x1af   :  { %v353_v30 = vpack.c.bf16 %v333_v29, %v333_v29 }
 0x1b1   :  { %478 = vmatmul.mubr.bf16.vlgmr.msra.gmra.mrb[0].mxu1 %v353_v30 }
 0x284   :  { %v479_v38 = vpop.f32.mrb[0].mxu1 }
 0x285   :  { %v480_v39 = vadd.f32 %v479_v38, %v358_v36  ;;  %v481_v40 = vpop.f32.mrb[1].mxu1 }
 0x286   :  { %v482_v41 = vadd.f32 %v481_v40, %v362_v37  ;;  %v483_v42 = vpop.f32.mrb[2].mxu1 }
 0x287   :  { %v486_v43 = vrot.slane %v480_v39, 4  ;;  %v498_v44 = vmul.f32 %v480_v39, %v480_v39  ;;  %v484_v45 = vpop.f32.mrb[3].mxu1 }
 0x288   :  { %v492_v46 = vrot.slane %v482_v41, 4  ;;  %v499_v47 = vmul.f32 %v482_v41, %v482_v41 }
 0x289   :  { %v487_v48 = vadd.f32 %v486_v43, %v480_v39  ;;  %v500_v49 = vrot.slane %v498_v44, 4 }
 0x28a   :  { %v493_v50 = vadd.f32 %v492_v46, %v482_v41  ;;  %v506_v51 = vrot.slane %v499_v47, 4 }
 0x28b   :  { %v488_v52 = vrot.slane %v487_v48, 2  ;;  %v501_v53 = vadd.f32 %v500_v49, %v498_v44 }
 0x28c   :  { %v494_v54 = vrot.slane %v493_v50, 2  ;;  %v507_v55 = vadd.f32 %v506_v51, %v499_v47 }
 0x28d   :  { %v489_v56 = vadd.f32 %v488_v52, %v487_v48  ;;  %v502_v57 = vrot.slane %v501_v53, 2 }
 0x28e   :  { %v495_v58 = vadd.f32 %v494_v54, %v493_v50  ;;  %v508_v59 = vrot.slane %v507_v55, 2 }
 0x28f   :  { %v490_v60 = vrot.slane %v489_v56, 1  ;;  %v503_v61 = vadd.f32 %v502_v57, %v501_v53 }
 0x290   :  { %v496_v62 = vrot.slane %v495_v58, 1  ;;  %v509_v63 = vadd.f32 %v508_v59, %v507_v55 }
 0x291   :  { %v491_v1 = vadd.f32 %v490_v60, %v489_v56  ;;  %v504_v2 = vrot.slane %v503_v61, 1 }
 0x292   :  { %v497_v3 = vadd.f32 %v496_v62, %v495_v58  ;;  %v510_v4 = vrot.slane %v509_v63, 1 }
 0x293   :  { %v505_v5 = vadd.f32 %v504_v2, %v503_v61  ;;  %v512_v6 = vmul.f32 0.125, %v491_v1 }
 0x294   :  { %v511_v7 = vadd.f32 %v510_v4, %v509_v63  ;;  %v513_v8 = vmul.f32 0.125, %v497_v3 }
 0x295   :  { %v514_v9 = vmul.f32 0.125, %v505_v5  ;;  %v516_v10 = vmul.f32 %v512_v6, %v512_v6  ;;  %v520_v19 = vsub.f32 %v480_v39, %v512_v6 }
 0x296   :  { %v515_v11 = vmul.f32 0.125, %v511_v7  ;;  %v517_v12 = vmul.f32 %v513_v8, %v513_v8  ;;  %v521_v22 = vsub.f32 %v482_v41, %v513_v8 }
 0x297   :  { %v518_v13 = vsub.f32 %v514_v9, %v516_v10 }
 0x298   :  { %v519_v14 = vsub.f32 %v515_v11, %v517_v12 }
 0x299   :  { %v522_v15 = vadd.f32 0.8, %v518_v13 }
 0x29a   :  { %v523_v16 = vadd.f32 0.8, %v519_v14 }
 0x29b   :  { %2303 = vrsqrt.f32 %v522_v15 }
 0x29c   :  { %2305 = vrsqrt.f32 %v523_v16 }
 0x2a5   :  { %v2304_v21 = vpop.eup %2303 }
 0x2a6   :  { %v2306_v24 = vpop.eup %2305  ;;  %v526_v25 = vmul.f32 %v2304_v21, %v520_v19 }
 0x2a7   :  { %v527_v27 = vmul.f32 %v2306_v24, %v521_v22 }
 0x2a8   :  { %v539_v29 = vmul.f32 %v532_v20, %v526_v25 }
 0x2a9   :  { %v540_v30 = vmul.f32 %v536_v23, %v527_v27 }
 0x2aa   :  { %v552_v31 = vadd.f32 %v545_v26, %v539_v29 }
 0x2ab   :  { %v553_v34 = vadd.f32 %v549_v28, %v540_v30 }
 0x2ac   :  { %vm554_vm3 = vcmp.gt.f32.partialorder %v552_v31, 0.0  ;;  %v556_v36 = vmul.f32 0.2, %v552_v31 }
 0x2ad   :  { %vm555_vm4 = vcmp.gt.f32.partialorder %v553_v34, 0.0  ;;  %v557_v37 = vmul.f32 0.2, %v553_v34 }
 0x2ae   :  { %v2837_v38 = vsel %vm554_vm3, %v552_v31, %v556_v36 }
 0x2af   :  { %v559_v39 = vsel %vm555_vm4, %v553_v34, %v557_v37 }
 0x2b0   :  { %2539 = dma.done.wait [#allocation5], 8192 }
 0x2b1   :  { %2540 = vsyncadd [#allocation5], 4294959104  ;;  %v2839_v40 = vpack.c.bf16 %v559_v39, %v559_v39  ;;  %v565_v41 = vld [vmem:[#allocation2 + $0x8] sm:$0xff]  ;;  %v564_v42 = vld [vmem:[#allocation2] sm:$0xff]  ;;  %v2844_v11 = vpack.c.bf16 %v2837_v38, %v2837_v38 }
 0x2b2   :  { %v569_v43 = vld [vmem:[#allocation2 + $0x28] sm:$0xff]  ;;  %654 = vmatprep.subr.bf16.mxu1 %v565_v41  ;;  %v568_v44 = vld [vmem:[#allocation2 + $0x20] sm:$0xff]  ;;  %v567_v10 = vld [vmem:[#allocation2 + $0x18] sm:$0xff] }
 0x2b3   :  { %686 = vmatprep.mubr.bf16.mxu1 %v2839_v40  ;;  %655 = vmatpush1.bf16.msra.mxu1 %v564_v42  ;;  %v573_v45 = vld [vmem:[#allocation2 + $0x48] sm:$0xff]  ;;  %v572_v46 = vld [vmem:[#allocation2 + $0x40] sm:$0xff]  ;;  %v566_v12 = vld [vmem:[#allocation2 + $0x10] sm:$0xff] }
 0x2b4   :  { %656 = vmatprep.subr.bf16.mxu1 %v569_v43  ;;  %v577_v47 = vld [vmem:[#allocation2 + $0x68] sm:$0xff]  ;;  %v576_v48 = vld [vmem:[#allocation2 + $0x60] sm:$0xff]  ;;  %v571_v13 = vld [vmem:[#allocation2 + $0x38] sm:$0xff] }
 0x2b5   :  { %v581_v49 = vld [vmem:[#allocation2 + $0x88] sm:$0xff]  ;;  %v580_v50 = vld [vmem:[#allocation2 + $0x80] sm:$0xff]  ;;  %v570_v14 = vld [vmem:[#allocation2 + $0x30] sm:$0xff] }
 0x2b6   :  { %v585_v51 = vld [vmem:[#allocation2 + $0xa8] sm:$0xff]  ;;  %v584_v52 = vld [vmem:[#allocation2 + $0xa0] sm:$0xff]  ;;  %v575_v15 = vld [vmem:[#allocation2 + $0x58] sm:$0xff] }
 0x2b7   :  { %657 = vmatpush1.bf16.msra.mxu1 %v568_v44  ;;  %v589_v53 = vld [vmem:[#allocation2 + $0xc8] sm:$0xff]  ;;  %v588_v54 = vld [vmem:[#allocation2 + $0xc0] sm:$0xff]  ;;  %v574_v16 = vld [vmem:[#allocation2 + $0x50] sm:$0xff] }
 0x2b8   :  { %658 = vmatprep.subr.bf16.mxu1 %v573_v45  ;;  %v593_v55 = vld [vmem:[#allocation2 + $0xe8] sm:$0xff]  ;;  %v592_v56 = vld [vmem:[#allocation2 + $0xe0] sm:$0xff]  ;;  %v579_v17 = vld [vmem:[#allocation2 + $0x78] sm:$0xff] }
 0x2b9   :  { %v597_v57 = vld [vmem:[#allocation2 + $0x108] sm:$0xff]  ;;  %v596_v58 = vld [vmem:[#allocation2 + $0x100] sm:$0xff]  ;;  %v578_v18 = vld [vmem:[#allocation2 + $0x70] sm:$0xff] }
 0x2ba   :  { %v601_v59 = vld [vmem:[#allocation2 + $0x128] sm:$0xff]  ;;  %v600_v60 = vld [vmem:[#allocation2 + $0x120] sm:$0xff]  ;;  %v583_v19 = vld [vmem:[#allocation2 + $0x98] sm:$0xff] }
 0x2bb   :  { %659 = vmatpush1.bf16.msra.mxu1 %v572_v46  ;;  %v605_v61 = vld [vmem:[#allocation2 + $0x148] sm:$0xff]  ;;  %v604_v62 = vld [vmem:[#allocation2 + $0x140] sm:$0xff]  ;;  %v582_v20 = vld [vmem:[#allocation2 + $0x90] sm:$0xff] }
 0x2bc   :  { %660 = vmatprep.subr.bf16.mxu1 %v577_v47  ;;  %v609_v63 = vld [vmem:[#allocation2 + $0x168] sm:$0xff]  ;;  %v608_v1 = vld [vmem:[#allocation2 + $0x160] sm:$0xff]  ;;  %v587_v21 = vld [vmem:[#allocation2 + $0xb8] sm:$0xff] }
 0x2bd   :  { %v613_v2 = vld [vmem:[#allocation2 + $0x188] sm:$0xff]  ;;  %v612_v3 = vld [vmem:[#allocation2 + $0x180] sm:$0xff]  ;;  %v586_v22 = vld [vmem:[#allocation2 + $0xb0] sm:$0xff] }
 0x2be   :  { %v617_v4 = vld [vmem:[#allocation2 + $0x1a8] sm:$0xff]  ;;  %v616_v5 = vld [vmem:[#allocation2 + $0x1a0] sm:$0xff]  ;;  %v591_v23 = vld [vmem:[#allocation2 + $0xd8] sm:$0xff] }
 0x2bf   :  { %661 = vmatpush1.bf16.msra.mxu1 %v576_v48  ;;  %v621_v6 = vld [vmem:[#allocation2 + $0x1c8] sm:$0xff]  ;;  %v620_v7 = vld [vmem:[#allocation2 + $0x1c0] sm:$0xff]  ;;  %v590_v24 = vld [vmem:[#allocation2 + $0xd0] sm:$0xff] }
 0x2c0   :  { %662 = vmatprep.subr.bf16.mxu1 %v581_v49  ;;  %v625_v8 = vld [vmem:[#allocation2 + $0x1e8] sm:$0xff]  ;;  %v624_v9 = vld [vmem:[#allocation2 + $0x1e0] sm:$0xff]  ;;  %v595_v25 = vld [vmem:[#allocation2 + $0xf8] sm:$0xff] }
 0x2c1   :  { %v594_v26 = vld [vmem:[#allocation2 + $0xf0] sm:$0xff]  ;;  %v599_v27 = vld [vmem:[#allocation2 + $0x118] sm:$0xff] }
 0x2c2   :  { %v598_v28 = vld [vmem:[#allocation2 + $0x110] sm:$0xff]  ;;  %v603_v29 = vld [vmem:[#allocation2 + $0x138] sm:$0xff] }
 0x2c3   :  { %663 = vmatpush1.bf16.msra.mxu1 %v580_v50  ;;  %v602_v30 = vld [vmem:[#allocation2 + $0x130] sm:$0xff]  ;;  %v607_v31 = vld [vmem:[#allocation2 + $0x158] sm:$0xff] }
 0x2c4   :  { %664 = vmatprep.subr.bf16.mxu1 %v585_v51  ;;  %v606_v34 = vld [vmem:[#allocation2 + $0x150] sm:$0xff]  ;;  %v611_v36 = vld [vmem:[#allocation2 + $0x178] sm:$0xff] }
 0x2c5   :  { %v610_v37 = vld [vmem:[#allocation2 + $0x170] sm:$0xff]  ;;  %v615_v38 = vld [vmem:[#allocation2 + $0x198] sm:$0xff] }
 0x2c6   :  { %v614_v39 = vld [vmem:[#allocation2 + $0x190] sm:$0xff]  ;;  %v623_v42 = vld [vmem:[#allocation2 + $0x1d8] sm:$0xff] }
 0x2c7   :  { %665 = vmatpush1.bf16.msra.mxu1 %v584_v52  ;;  %v618_v41 = vld [vmem:[#allocation2 + $0x1b0] sm:$0xff]  ;;  %v627_v44 = vld [vmem:[#allocation2 + $0x1f8] sm:$0xff] }
 0x2c8   :  { %666 = vmatprep.subr.bf16.mxu1 %v589_v53  ;;  %v622_v43 = vld [vmem:[#allocation2 + $0x1d0] sm:$0xff] }
 0x2c9   :  { %v626_v45 = vld [vmem:[#allocation2 + $0x1f0] sm:$0xff] }
 0x2ca   :  { %v2849_v46 = vld [vmem:[#allocation14] sm:$0xf] }
 0x2cb   :  { %667 = vmatpush1.bf16.msra.mxu1 %v588_v54  ;;  %v637_v47 = vrot.slane %v2849_v46, %v2826_v33  ;;  %v641_v48 = vrot.slane %v2849_v46, %v2829_v35 }
 0x2cc   :  { %668 = vmatprep.subr.bf16.mxu1 %v593_v55 }
 0x2cf   :  { %669 = vmatpush1.bf16.msra.mxu1 %v592_v56 }
 0x2d0   :  { %670 = vmatprep.subr.bf16.mxu1 %v597_v57 }
 0x2d3   :  { %671 = vmatpush1.bf16.msra.mxu1 %v596_v58 }
 0x2d4   :  { %672 = vmatprep.subr.bf16.mxu1 %v601_v59 }
 0x2d7   :  { %673 = vmatpush1.bf16.msra.mxu1 %v600_v60 }
 0x2d8   :  { %674 = vmatprep.subr.bf16.mxu1 %v605_v61 }
 0x2db   :  { %675 = vmatpush1.bf16.msra.mxu1 %v604_v62 }
 0x2dc   :  { %676 = vmatprep.subr.bf16.mxu1 %v609_v63 }
 0x2df   :  { %677 = vmatpush1.bf16.msra.mxu1 %v608_v1 }
 0x2e0   :  { %678 = vmatprep.subr.bf16.mxu1 %v613_v2 }
 0x2e3   :  { %679 = vmatpush1.bf16.msra.mxu1 %v612_v3 }
 0x2e4   :  { %680 = vmatprep.subr.bf16.mxu1 %v617_v4 }
 0x2e7   :  { %681 = vmatpush1.bf16.msra.mxu1 %v616_v5 }
 0x2e8   :  { %682 = vmatprep.subr.bf16.mxu1 %v621_v6 }
 0x2eb   :  { %683 = vmatpush1.bf16.msra.mxu1 %v620_v7 }
 0x2ec   :  { %684 = vmatprep.subr.bf16.mxu1 %v625_v8 }
 0x2ef   :  { %685 = vmatpush1.bf16.msra.mxu1 %v624_v9 }
 0x2f0   :  { %695 = vmatprep.subr.bf16.mxu1 %v567_v10 }
 0x2f2   :  { %687 = vmatmul.mubr.bf16.vlgmr.msra.gmra.mrb[4].mxu1 %v2844_v11 }
 0x2f3   :  { %696 = vmatpush1.bf16.msra.mxu1 %v566_v12  ;;  %727 = vmatprep.mubr.bf16.mxu1 %v2839_v40  ;;  %v619_v40 = vld [vmem:[#allocation2 + $0x1b8] sm:$0xff] }
 0x2f4   :  { %697 = vmatprep.subr.bf16.mxu1 %v571_v13 }
 0x2f7   :  { %698 = vmatpush1.bf16.msra.mxu1 %v570_v14 }
 0x2f8   :  { %699 = vmatprep.subr.bf16.mxu1 %v575_v15 }
 0x2fb   :  { %700 = vmatpush1.bf16.msra.mxu1 %v574_v16 }
 0x2fc   :  { %701 = vmatprep.subr.bf16.mxu1 %v579_v17 }
 0x2ff   :  { %702 = vmatpush1.bf16.msra.mxu1 %v578_v18 }
 0x300   :  { %703 = vmatprep.subr.bf16.mxu1 %v583_v19 }
 0x303   :  { %704 = vmatpush1.bf16.msra.mxu1 %v582_v20 }
 0x304   :  { %705 = vmatprep.subr.bf16.mxu1 %v587_v21 }
 0x307   :  { %706 = vmatpush1.bf16.msra.mxu1 %v586_v22 }
 0x308   :  { %707 = vmatprep.subr.bf16.mxu1 %v591_v23 }
 0x30b   :  { %708 = vmatpush1.bf16.msra.mxu1 %v590_v24 }
 0x30c   :  { %709 = vmatprep.subr.bf16.mxu1 %v595_v25 }
 0x30f   :  { %710 = vmatpush1.bf16.msra.mxu1 %v594_v26 }
 0x310   :  { %711 = vmatprep.subr.bf16.mxu1 %v599_v27 }
 0x313   :  { %712 = vmatpush1.bf16.msra.mxu1 %v598_v28  ;;  %v2858_v28 = vld [vmem:[%s3076_s9] sm:$0xf] }
 0x314   :  { %713 = vmatprep.subr.bf16.mxu1 %v603_v29  ;;  %v2860_v29 = vld [vmem:[#allocation16] sm:$0xf] }
 0x317   :  { %714 = vmatpush1.bf16.msra.mxu1 %v602_v30 }
 0x318   :  { %715 = vmatprep.subr.bf16.mxu1 %v607_v31  ;;  %v824_v31 = vrot.slane %v2858_v28, %v2826_v33 }
 0x31b   :  { %716 = vmatpush1.bf16.msra.mxu1 %v606_v34 }
 0x31c   :  { %717 = vmatprep.subr.bf16.mxu1 %v611_v36 }
 0x31f   :  { %718 = vmatpush1.bf16.msra.mxu1 %v610_v37  ;;  %v828_v37 = vrot.slane %v2858_v28, %v2829_v35 }
 0x320   :  { %719 = vmatprep.subr.bf16.mxu1 %v615_v38 }
 0x323   :  { %720 = vmatpush1.bf16.msra.mxu1 %v614_v39 }
 0x324   :  { %721 = vmatprep.subr.bf16.mxu1 %v619_v40  ;;  %v849_v40 = vrot.slane %v2860_v29, %v2826_v33 }
 0x327   :  { %722 = vmatpush1.bf16.msra.mxu1 %v618_v41 }
 0x328   :  { %723 = vmatprep.subr.bf16.mxu1 %v623_v42  ;;  %v853_v42 = vrot.slane %v2860_v29, %v2829_v35 }
 0x32b   :  { %724 = vmatpush1.bf16.msra.mxu1 %v622_v43 }
 0x32c   :  { %725 = vmatprep.subr.bf16.mxu1 %v627_v44 }
 0x32f   :  { %726 = vmatpush1.bf16.msra.mxu1 %v626_v45 }
 0x332   :  { %728 = vmatmul.mubr.bf16.vlgmr.msra.gmra.mrb[8].mxu1 %v2844_v11 }
 0x3c5   :  { %v688_v49 = vpop.f32.mrb[4].mxu1 }
 0x3c6   :  { %v689_v50 = vadd.f32 %v688_v49, %v637_v47  ;;  %v690_v51 = vpop.f32.mrb[5].mxu1 }
 0x3c7   :  { %v691_v52 = vadd.f32 %v690_v51, %v641_v48  ;;  %v692_v53 = vpop.f32.mrb[6].mxu1 }
 0x3c8   :  { %v736_v54 = vrot.slane %v689_v50, 4  ;;  %v760_v55 = vmul.f32 %v689_v50, %v689_v50  ;;  %v693_v56 = vpop.f32.mrb[7].mxu1  ;;  %v2878_v53 = vsub.s32 3, %v2823_v32 }
 0x3c9   :  { %v742_v57 = vrot.slane %v691_v52, 4  ;;  %v761_v58 = vmul.f32 %v691_v52, %v691_v52 }
 0x3ca   :  { %v737_v59 = vadd.f32 %v736_v54, %v689_v50  ;;  %v764_v60 = vrot.slane %v760_v55, 4 }
 0x3cb   :  { %v743_v61 = vadd.f32 %v742_v57, %v691_v52  ;;  %v770_v62 = vrot.slane %v761_v58, 4 }
 0x3cc   :  { %v738_v63 = vrot.slane %v737_v59, 2  ;;  %v765_v1 = vadd.f32 %v764_v60, %v760_v55  ;;  %v649_v55 = vrot.slane %v2849_v46, %v2878_v53 }
 0x3cd   :  { %v744_v2 = vrot.slane %v743_v61, 2  ;;  %v771_v3 = vadd.f32 %v770_v62, %v761_v58 }
 0x3ce   :  { %v739_v4 = vadd.f32 %v738_v63, %v737_v59  ;;  %v766_v5 = vrot.slane %v765_v1, 2 }
 0x3cf   :  { %v745_v6 = vadd.f32 %v744_v2, %v743_v61  ;;  %v772_v7 = vrot.slane %v771_v3, 2 }
 0x3d0   :  { %v740_v8 = vrot.slane %v739_v4, 1  ;;  %v767_v9 = vadd.f32 %v766_v5, %v765_v1 }
 0x3d1   :  { %v746_v10 = vrot.slane %v745_v6, 1  ;;  %v773_v11 = vadd.f32 %v772_v7, %v771_v3 }
 0x3d2   :  { %v741_v12 = vadd.f32 %v740_v8, %v739_v4  ;;  %v768_v13 = vrot.slane %v767_v9, 1 }
 0x3d3   :  { %v747_v14 = vadd.f32 %v746_v10, %v745_v6  ;;  %v774_v15 = vrot.slane %v773_v11, 1 }
 0x3d4   :  { %v769_v16 = vadd.f32 %v768_v13, %v767_v9  ;;  %v788_v17 = vmul.f32 0.125, %v741_v12 }
 0x3d5   :  { %v775_v18 = vadd.f32 %v774_v15, %v773_v11  ;;  %v789_v19 = vmul.f32 0.125, %v747_v14 }
 0x3d6   :  { %v792_v20 = vmul.f32 0.125, %v769_v16  ;;  %v796_v21 = vmul.f32 %v788_v17, %v788_v17  ;;  %v804_v30 = vsub.f32 %v689_v50, %v788_v17 }
 0x3d7   :  { %v793_v22 = vmul.f32 0.125, %v775_v18  ;;  %v797_v23 = vmul.f32 %v789_v19, %v789_v19  ;;  %v805_v36 = vsub.f32 %v691_v52, %v789_v19  ;;  %v2875_v52 = vsub.s32 2, %v2823_v32 }
 0x3d8   :  { %v800_v24 = vsub.f32 %v792_v20, %v796_v21 }
 0x3d9   :  { %v801_v25 = vsub.f32 %v793_v22, %v797_v23  ;;  %v645_v54 = vrot.slane %v2849_v46, %v2875_v52 }
 0x3da   :  { %v808_v26 = vadd.f32 0.8, %v800_v24 }
 0x3db   :  { %v809_v27 = vadd.f32 0.8, %v801_v25 }
 0x3dc   :  { %2307 = vrsqrt.f32 %v808_v26 }
 0x3dd   :  { %2309 = vrsqrt.f32 %v809_v27 }
 0x3e6   :  { %v2308_v34 = vpop.eup %2307 }
 0x3e7   :  { %v2310_v38 = vpop.eup %2309  ;;  %v816_v39 = vmul.f32 %v2308_v34, %v804_v30 }
 0x3e8   :  { %v817_v41 = vmul.f32 %v2310_v38, %v805_v36 }
 0x3e9   :  { %v841_v43 = vmul.f32 %v824_v31, %v816_v39 }
 0x3ea   :  { %v842_v44 = vmul.f32 %v828_v37, %v817_v41 }
 0x3eb   :  { %v866_v45 = vadd.f32 %v849_v40, %v841_v43  ;;  %v832_v40 = vrot.slane %v2858_v28, %v2875_v52  ;;  %v836_v43 = vrot.slane %v2858_v28, %v2878_v53 }
 0x3ec   :  { %v867_v47 = vadd.f32 %v853_v42, %v842_v44 }
 0x3ed   :  { %vm870_vm5 = vcmp.gt.f32.partialorder %v866_v45, 0.0  ;;  %v874_v48 = vmul.f32 0.2, %v866_v45 }
 0x3ee   :  { %vm871_vm6 = vcmp.gt.f32.partialorder %v867_v47, 0.0  ;;  %v875_v49 = vmul.f32 0.2, %v867_v47 }
 0x3ef   :  { %v2870_v50 = vsel %vm870_vm5, %v866_v45, %v874_v48 }
 0x3f0   :  { %v2872_v51 = vsel %vm871_vm6, %v867_v47, %v875_v49  ;;  %v857_v47 = vrot.slane %v2860_v29, %v2875_v52  ;;  %v861_v49 = vrot.slane %v2860_v29, %v2878_v53 }
 0x405   :  { %v729_v56 = vpop.f32.mrb[8].mxu1 }
 0x406   :  { %v730_v57 = vadd.f32 %v729_v56, %v645_v54  ;;  %v731_v58 = vpop.f32.mrb[9].mxu1 }
 0x407   :  { %v732_v59 = vadd.f32 %v731_v58, %v649_v55  ;;  %v733_v60 = vpop.f32.mrb[10].mxu1 }
 0x408   :  { %v748_v61 = vrot.slane %v730_v57, 4  ;;  %v762_v62 = vmul.f32 %v730_v57, %v730_v57  ;;  %v734_v63 = vpop.f32.mrb[11].mxu1 }
 0x409   :  { %v754_v1 = vrot.slane %v732_v59, 4  ;;  %v763_v2 = vmul.f32 %v732_v59, %v732_v59 }
 0x40a   :  { %v749_v3 = vadd.f32 %v748_v61, %v730_v57  ;;  %v776_v4 = vrot.slane %v762_v62, 4 }
 0x40b   :  { %v755_v5 = vadd.f32 %v754_v1, %v732_v59  ;;  %v782_v6 = vrot.slane %v763_v2, 4 }
 0x40c   :  { %v750_v7 = vrot.slane %v749_v3, 2  ;;  %v777_v8 = vadd.f32 %v776_v4, %v762_v62 }
 0x40d   :  { %v756_v9 = vrot.slane %v755_v5, 2  ;;  %v783_v10 = vadd.f32 %v782_v6, %v763_v2 }
 0x40e   :  { %v751_v11 = vadd.f32 %v750_v7, %v749_v3  ;;  %v778_v46 = vrot.slane %v777_v8, 2 }
 0x40f   :  { %v757_v12 = vadd.f32 %v756_v9, %v755_v5  ;;  %v784_v13 = vrot.slane %v783_v10, 2 }
 0x410   :  { %v752_v14 = vrot.slane %v751_v11, 1  ;;  %v779_v15 = vadd.f32 %v778_v46, %v777_v8 }
 0x411   :  { %v758_v16 = vrot.slane %v757_v12, 1  ;;  %v785_v17 = vadd.f32 %v784_v13, %v783_v10 }
 0x412   :  { %v753_v18 = vadd.f32 %v752_v14, %v751_v11  ;;  %v780_v19 = vrot.slane %v779_v15, 1 }
 0x413   :  { %v759_v20 = vadd.f32 %v758_v16, %v757_v12  ;;  %v786_v21 = vrot.slane %v785_v17, 1 }
 0x414   :  { %v781_v22 = vadd.f32 %v780_v19, %v779_v15  ;;  %v790_v23 = vmul.f32 0.125, %v753_v18 }
 0x415   :  { %v787_v24 = vadd.f32 %v786_v21, %v785_v17  ;;  %v791_v25 = vmul.f32 0.125, %v759_v20 }
 0x416   :  { %v794_v26 = vmul.f32 0.125, %v781_v22  ;;  %v798_v27 = vmul.f32 %v790_v23, %v790_v23  ;;  %v806_v39 = vsub.f32 %v730_v57, %v790_v23 }
 0x417   :  { %v795_v30 = vmul.f32 0.125, %v787_v24  ;;  %v799_v31 = vmul.f32 %v791_v25, %v791_v25  ;;  %v807_v42 = vsub.f32 %v732_v59, %v791_v25 }
 0x418   :  { %v802_v34 = vsub.f32 %v794_v26, %v798_v27 }
 0x419   :  { %v803_v36 = vsub.f32 %v795_v30, %v799_v31 }
 0x41a   :  { %v810_v37 = vadd.f32 0.8, %v802_v34 }
 0x41b   :  { %v811_v38 = vadd.f32 0.8, %v803_v36 }
 0x41c   :  { %2311 = vrsqrt.f32 %v810_v37 }
 0x41d   :  { %2313 = vrsqrt.f32 %v811_v38 }
 0x426   :  { %v2312_v41 = vpop.eup %2311 }
 0x427   :  { %v2314_v44 = vpop.eup %2313  ;;  %v818_v45 = vmul.f32 %v2312_v41, %v806_v39 }
 0x428   :  { %v819_v48 = vmul.f32 %v2314_v44, %v807_v42 }
 0x429   :  { %v843_v54 = vmul.f32 %v832_v40, %v818_v45 }
 0x42a   :  { %v844_v55 = vmul.f32 %v836_v43, %v819_v48 }
 0x42b   :  { %v868_v56 = vadd.f32 %v857_v47, %v843_v54 }
 0x42c   :  { %v869_v57 = vadd.f32 %v861_v49, %v844_v55 }
 0x42d   :  { %vm872_vm7 = vcmp.gt.f32.partialorder %v868_v56, 0.0  ;;  %v876_v58 = vmul.f32 0.2, %v868_v56 }
 0x42e   :  { %vm873_vm8 = vcmp.gt.f32.partialorder %v869_v57, 0.0  ;;  %v877_v59 = vmul.f32 0.2, %v869_v57 }
 0x42f   :  { %v2892_v60 = vsel %vm872_vm7, %v868_v56, %v876_v58 }
 0x430   :  { %v881_v28 = vsel %vm873_vm8, %v869_v57, %v877_v59 }
 0x431   :  { %2541 = dma.done.wait [#allocation5 + $0x1], 32768 }
 0x432   :  { %2542 = vsyncadd [#allocation5 + $0x1], 4294934528  ;;  %v2896_v61 = vpack.c.bf16 %v2872_v51, %v2872_v51  ;;  %v2898_v62 = vpack.c.bf16 %v881_v28, %v881_v28  ;;  %v887_v29 = vld [vmem:[#allocation3 + $0x8] sm:$0xff]  ;;  %v886_v63 = vld [vmem:[#allocation3] sm:$0xff] }
 0x433   :  { %v1015_v1 = vld [vmem:[#allocation3 + $0x408] sm:$0xff]  ;;  %1190 = vmatprep.subr.bf16.mxu1 %v887_v29  ;;  %v1014_v2 = vld [vmem:[#allocation3 + $0x400] sm:$0xff] }
 0x434   :  { %1222 = vmatprep.mubr.bf16.mxu1 %v2896_v61  ;;  %1263 = vmatprep.mubr.bf16.mxu0 %v2898_v62  ;;  %v895_v3 = vld [vmem:[#allocation3 + $0x48] sm:$0xff]  ;;  %v894_v5 = vld [vmem:[#allocation3 + $0x40] sm:$0xff] }
 0x435   :  { %1231 = vmatprep.subr.bf16.mxu0 %v1015_v1  ;;  %1191 = vmatpush1.bf16.msra.mxu1 %v886_v63  ;;  %v1023_v4 = vld [vmem:[#allocation3 + $0x448] sm:$0xff]  ;;  %v1022_v51 = vld [vmem:[#allocation3 + $0x440] sm:$0xff] }
 0x436   :  { %1232 = vmatpush1.bf16.msra.mxu0 %v1014_v2  ;;  %1192 = vmatprep.subr.bf16.mxu1 %v895_v3  ;;  %v903_v6 = vld [vmem:[#allocation3 + $0x88] sm:$0xff]  ;;  %v902_v8 = vld [vmem:[#allocation3 + $0x80] sm:$0xff] }
 0x437   :  { %1233 = vmatprep.subr.bf16.mxu0 %v1023_v4  ;;  %v1031_v7 = vld [vmem:[#allocation3 + $0x488] sm:$0xff]  ;;  %v1030_v9 = vld [vmem:[#allocation3 + $0x480] sm:$0xff] }
 0x438   :  { %v911_v10 = vld [vmem:[#allocation3 + $0xc8] sm:$0xff]  ;;  %v910_v46 = vld [vmem:[#allocation3 + $0xc0] sm:$0xff] }
 0x439   :  { %1193 = vmatpush1.bf16.msra.mxu1 %v894_v5  ;;  %v1039_v11 = vld [vmem:[#allocation3 + $0x4c8] sm:$0xff]  ;;  %v1038_v12 = vld [vmem:[#allocation3 + $0x4c0] sm:$0xff] }
 0x43a   :  { %1234 = vmatpush1.bf16.msra.mxu0 %v1022_v51  ;;  %1194 = vmatprep.subr.bf16.mxu1 %v903_v6  ;;  %v919_v13 = vld [vmem:[#allocation3 + $0x108] sm:$0xff]  ;;  %v918_v15 = vld [vmem:[#allocation3 + $0x100] sm:$0xff] }
 0x43b   :  { %1235 = vmatprep.subr.bf16.mxu0 %v1031_v7  ;;  %v1047_v14 = vld [vmem:[#allocation3 + $0x508] sm:$0xff]  ;;  %v1046_v16 = vld [vmem:[#allocation3 + $0x500] sm:$0xff] }
 0x43c   :  { %v927_v17 = vld [vmem:[#allocation3 + $0x148] sm:$0xff]  ;;  %v926_v19 = vld [vmem:[#allocation3 + $0x140] sm:$0xff] }
 0x43d   :  { %1195 = vmatpush1.bf16.msra.mxu1 %v902_v8  ;;  %v1055_v18 = vld [vmem:[#allocation3 + $0x548] sm:$0xff]  ;;  %v1054_v20 = vld [vmem:[#allocation3 + $0x540] sm:$0xff]  ;;  %v889_v8 = vld [vmem:[#allocation3 + $0x18] sm:$0xff] }
 0x43e   :  { %1236 = vmatpush1.bf16.msra.mxu0 %v1030_v9  ;;  %1196 = vmatprep.subr.bf16.mxu1 %v911_v10  ;;  %v935_v21 = vld [vmem:[#allocation3 + $0x188] sm:$0xff]  ;;  %v934_v23 = vld [vmem:[#allocation3 + $0x180] sm:$0xff]  ;;  %v2904_v10 = vpack.c.bf16 %v2870_v50, %v2870_v50  ;;  %v896_v50 = vld [vmem:[#allocation3 + $0x50] sm:$0xff] }
 0x43f   :  { %1237 = vmatprep.subr.bf16.mxu0 %v1039_v11  ;;  %v1063_v22 = vld [vmem:[#allocation3 + $0x588] sm:$0xff]  ;;  %v1062_v24 = vld [vmem:[#allocation3 + $0x580] sm:$0xff]  ;;  %v2908_v11 = vpack.c.bf16 %v2892_v60, %v2892_v60  ;;  %v905_v60 = vld [vmem:[#allocation3 + $0x98] sm:$0xff] }
 0x440   :  { %v943_v25 = vld [vmem:[#allocation3 + $0x1c8] sm:$0xff]  ;;  %v942_v27 = vld [vmem:[#allocation3 + $0x1c0] sm:$0xff] }
 0x441   :  { %1197 = vmatpush1.bf16.msra.mxu1 %v910_v46  ;;  %v1071_v26 = vld [vmem:[#allocation3 + $0x5c8] sm:$0xff]  ;;  %v1070_v30 = vld [vmem:[#allocation3 + $0x5c0] sm:$0xff]  ;;  %v888_v46 = vld [vmem:[#allocation3 + $0x10] sm:$0xff] }
 0x442   :  { %1238 = vmatpush1.bf16.msra.mxu0 %v1038_v12  ;;  %1198 = vmatprep.subr.bf16.mxu1 %v919_v13  ;;  %v951_v31 = vld [vmem:[#allocation3 + $0x208] sm:$0xff]  ;;  %v950_v36 = vld [vmem:[#allocation3 + $0x200] sm:$0xff]  ;;  %v897_v13 = vld [vmem:[#allocation3 + $0x58] sm:$0xff] }
 0x443   :  { %1239 = vmatprep.subr.bf16.mxu0 %v1047_v14  ;;  %v1079_v34 = vld [vmem:[#allocation3 + $0x608] sm:$0xff]  ;;  %v1078_v37 = vld [vmem:[#allocation3 + $0x600] sm:$0xff] }
 0x444   :  { %v959_v38 = vld [vmem:[#allocation3 + $0x248] sm:$0xff]  ;;  %v958_v40 = vld [vmem:[#allocation3 + $0x240] sm:$0xff] }
 0x445   :  { %1199 = vmatpush1.bf16.msra.mxu1 %v918_v15  ;;  %v1087_v39 = vld [vmem:[#allocation3 + $0x648] sm:$0xff]  ;;  %v1086_v41 = vld [vmem:[#allocation3 + $0x640] sm:$0xff] }
 0x446   :  { %1240 = vmatpush1.bf16.msra.mxu0 %v1046_v16  ;;  %1200 = vmatprep.subr.bf16.mxu1 %v927_v17  ;;  %v967_v42 = vld [vmem:[#allocation3 + $0x288] sm:$0xff]  ;;  %v966_v44 = vld [vmem:[#allocation3 + $0x280] sm:$0xff]  ;;  %v904_v17 = vld [vmem:[#allocation3 + $0x90] sm:$0xff] }
 0x447   :  { %1241 = vmatprep.subr.bf16.mxu0 %v1055_v18  ;;  %v1095_v43 = vld [vmem:[#allocation3 + $0x688] sm:$0xff]  ;;  %v1094_v45 = vld [vmem:[#allocation3 + $0x680] sm:$0xff] }
 0x448   :  { %v975_v47 = vld [vmem:[#allocation3 + $0x2c8] sm:$0xff]  ;;  %v974_v49 = vld [vmem:[#allocation3 + $0x2c0] sm:$0xff] }
 0x449   :  { %1201 = vmatpush1.bf16.msra.mxu1 %v926_v19  ;;  %v1103_v48 = vld [vmem:[#allocation3 + $0x6c8] sm:$0xff]  ;;  %v1102_v54 = vld [vmem:[#allocation3 + $0x6c0] sm:$0xff]  ;;  %v913_v19 = vld [vmem:[#allocation3 + $0xd8] sm:$0xff] }
 0x44a   :  { %1242 = vmatpush1.bf16.msra.mxu0 %v1054_v20  ;;  %1202 = vmatprep.subr.bf16.mxu1 %v935_v21  ;;  %v983_v55 = vld [vmem:[#allocation3 + $0x308] sm:$0xff]  ;;  %v982_v57 = vld [vmem:[#allocation3 + $0x300] sm:$0xff]  ;;  %v912_v21 = vld [vmem:[#allocation3 + $0xd0] sm:$0xff] }
 0x44b   :  { %1243 = vmatprep.subr.bf16.mxu0 %v1063_v22  ;;  %v1111_v56 = vld [vmem:[#allocation3 + $0x708] sm:$0xff]  ;;  %v1110_v58 = vld [vmem:[#allocation3 + $0x700] sm:$0xff] }
 0x44c   :  { %v991_v59 = vld [vmem:[#allocation3 + $0x348] sm:$0xff]  ;;  %v990_v29 = vld [vmem:[#allocation3 + $0x340] sm:$0xff] }
 0x44d   :  { %1203 = vmatpush1.bf16.msra.mxu1 %v934_v23  ;;  %v1119_v28 = vld [vmem:[#allocation3 + $0x748] sm:$0xff]  ;;  %v1118_v63 = vld [vmem:[#allocation3 + $0x740] sm:$0xff]  ;;  %v921_v23 = vld [vmem:[#allocation3 + $0x118] sm:$0xff] }
 0x44e   :  { %1244 = vmatpush1.bf16.msra.mxu0 %v1062_v24  ;;  %1204 = vmatprep.subr.bf16.mxu1 %v943_v25  ;;  %v999_v1 = vld [vmem:[#allocation3 + $0x388] sm:$0xff]  ;;  %v998_v3 = vld [vmem:[#allocation3 + $0x380] sm:$0xff]  ;;  %v920_v25 = vld [vmem:[#allocation3 + $0x110] sm:$0xff] }
 0x44f   :  { %1245 = vmatprep.subr.bf16.mxu0 %v1071_v26  ;;  %v1127_v2 = vld [vmem:[#allocation3 + $0x788] sm:$0xff]  ;;  %v1126_v4 = vld [vmem:[#allocation3 + $0x780] sm:$0xff] }
 0x450   :  { %v1007_v5 = vld [vmem:[#allocation3 + $0x3c8] sm:$0xff]  ;;  %v1006_v6 = vld [vmem:[#allocation3 + $0x3c0] sm:$0xff] }
 0x451   :  { %1205 = vmatpush1.bf16.msra.mxu1 %v942_v27  ;;  %v1135_v51 = vld [vmem:[#allocation3 + $0x7c8] sm:$0xff]  ;;  %v1134_v7 = vld [vmem:[#allocation3 + $0x7c0] sm:$0xff]  ;;  %v929_v27 = vld [vmem:[#allocation3 + $0x158] sm:$0xff] }
 0x452   :  { %1246 = vmatpush1.bf16.msra.mxu0 %v1070_v30  ;;  %1206 = vmatprep.subr.bf16.mxu1 %v951_v31  ;;  %v891_v9 = vld [vmem:[#allocation3 + $0x28] sm:$0xff]  ;;  %v890_v12 = vld [vmem:[#allocation3 + $0x20] sm:$0xff]  ;;  %v928_v31 = vld [vmem:[#allocation3 + $0x150] sm:$0xff] }
 0x453   :  { %1247 = vmatprep.subr.bf16.mxu0 %v1079_v34  ;;  %v899_v14 = vld [vmem:[#allocation3 + $0x68] sm:$0xff]  ;;  %v898_v15 = vld [vmem:[#allocation3 + $0x60] sm:$0xff] }
 0x454   :  { %v907_v16 = vld [vmem:[#allocation3 + $0xa8] sm:$0xff]  ;;  %v906_v18 = vld [vmem:[#allocation3 + $0xa0] sm:$0xff] }
 0x455   :  { %1207 = vmatpush1.bf16.msra.mxu1 %v950_v36  ;;  %v915_v20 = vld [vmem:[#allocation3 + $0xe8] sm:$0xff]  ;;  %v914_v22 = vld [vmem:[#allocation3 + $0xe0] sm:$0xff]  ;;  %v937_v36 = vld [vmem:[#allocation3 + $0x198] sm:$0xff] }
 0x456   :  { %1248 = vmatpush1.bf16.msra.mxu0 %v1078_v37  ;;  %1208 = vmatprep.subr.bf16.mxu1 %v959_v38  ;;  %v923_v24 = vld [vmem:[#allocation3 + $0x128] sm:$0xff]  ;;  %v922_v26 = vld [vmem:[#allocation3 + $0x120] sm:$0xff]  ;;  %v936_v38 = vld [vmem:[#allocation3 + $0x190] sm:$0xff] }
 0x457   :  { %1249 = vmatprep.subr.bf16.mxu0 %v1087_v39  ;;  %v931_v30 = vld [vmem:[#allocation3 + $0x168] sm:$0xff]  ;;  %v930_v34 = vld [vmem:[#allocation3 + $0x160] sm:$0xff] }
 0x458   :  { %v939_v37 = vld [vmem:[#allocation3 + $0x1a8] sm:$0xff]  ;;  %v938_v39 = vld [vmem:[#allocation3 + $0x1a0] sm:$0xff] }
 0x459   :  { %1209 = vmatpush1.bf16.msra.mxu1 %v958_v40  ;;  %v945_v40 = vld [vmem:[#allocation3 + $0x1d8] sm:$0xff] }
 0x45a   :  { %1250 = vmatpush1.bf16.msra.mxu0 %v1086_v41  ;;  %1210 = vmatprep.subr.bf16.mxu1 %v967_v42  ;;  %v947_v41 = vld [vmem:[#allocation3 + $0x1e8] sm:$0xff]  ;;  %v944_v42 = vld [vmem:[#allocation3 + $0x1d0] sm:$0xff] }
 0x45b   :  { %1251 = vmatprep.subr.bf16.mxu0 %v1095_v43  ;;  %v946_v43 = vld [vmem:[#allocation3 + $0x1e0] sm:$0xff] }
 0x45d   :  { %1211 = vmatpush1.bf16.msra.mxu1 %v966_v44  ;;  %v953_v44 = vld [vmem:[#allocation3 + $0x218] sm:$0xff] }
 0x45e   :  { %1252 = vmatpush1.bf16.msra.mxu0 %v1094_v45  ;;  %1212 = vmatprep.subr.bf16.mxu1 %v975_v47  ;;  %v955_v45 = vld [vmem:[#allocation3 + $0x228] sm:$0xff]  ;;  %v952_v47 = vld [vmem:[#allocation3 + $0x210] sm:$0xff] }
 0x45f   :  { %1253 = vmatprep.subr.bf16.mxu0 %v1103_v48  ;;  %v954_v48 = vld [vmem:[#allocation3 + $0x220] sm:$0xff] }
 0x461   :  { %1213 = vmatpush1.bf16.msra.mxu1 %v974_v49  ;;  %v961_v49 = vld [vmem:[#allocation3 + $0x258] sm:$0xff] }
 0x462   :  { %1254 = vmatpush1.bf16.msra.mxu0 %v1102_v54  ;;  %1214 = vmatprep.subr.bf16.mxu1 %v983_v55  ;;  %v963_v54 = vld [vmem:[#allocation3 + $0x268] sm:$0xff]  ;;  %v960_v55 = vld [vmem:[#allocation3 + $0x250] sm:$0xff] }
 0x463   :  { %1255 = vmatprep.subr.bf16.mxu0 %v1111_v56  ;;  %v962_v56 = vld [vmem:[#allocation3 + $0x260] sm:$0xff] }
 0x465   :  { %1215 = vmatpush1.bf16.msra.mxu1 %v982_v57  ;;  %v969_v57 = vld [vmem:[#allocation3 + $0x298] sm:$0xff] }
 0x466   :  { %1256 = vmatpush1.bf16.msra.mxu0 %v1110_v58  ;;  %1216 = vmatprep.subr.bf16.mxu1 %v991_v59  ;;  %v971_v58 = vld [vmem:[#allocation3 + $0x2a8] sm:$0xff]  ;;  %v968_v59 = vld [vmem:[#allocation3 + $0x290] sm:$0xff] }
 0x467   :  { %1257 = vmatprep.subr.bf16.mxu0 %v1119_v28  ;;  %v970_v28 = vld [vmem:[#allocation3 + $0x2a0] sm:$0xff] }
 0x469   :  { %1217 = vmatpush1.bf16.msra.mxu1 %v990_v29  ;;  %v977_v29 = vld [vmem:[#allocation3 + $0x2d8] sm:$0xff] }
 0x46a   :  { %1258 = vmatpush1.bf16.msra.mxu0 %v1118_v63  ;;  %1218 = vmatprep.subr.bf16.mxu1 %v999_v1  ;;  %v979_v63 = vld [vmem:[#allocation3 + $0x2e8] sm:$0xff]  ;;  %v976_v1 = vld [vmem:[#allocation3 + $0x2d0] sm:$0xff] }
 0x46b   :  { %1259 = vmatprep.subr.bf16.mxu0 %v1127_v2  ;;  %v978_v2 = vld [vmem:[#allocation3 + $0x2e0] sm:$0xff] }
 0x46d   :  { %1219 = vmatpush1.bf16.msra.mxu1 %v998_v3  ;;  %v985_v3 = vld [vmem:[#allocation3 + $0x318] sm:$0xff] }
 0x46e   :  { %1260 = vmatpush1.bf16.msra.mxu0 %v1126_v4  ;;  %1220 = vmatprep.subr.bf16.mxu1 %v1007_v5  ;;  %v987_v4 = vld [vmem:[#allocation3 + $0x328] sm:$0xff]  ;;  %v984_v5 = vld [vmem:[#allocation3 + $0x310] sm:$0xff] }
 0x46f   :  { %1261 = vmatprep.subr.bf16.mxu0 %v1135_v51  ;;  %v986_v51 = vld [vmem:[#allocation3 + $0x320] sm:$0xff] }
 0x471   :  { %1221 = vmatpush1.bf16.msra.mxu1 %v1006_v6  ;;  %v993_v6 = vld [vmem:[#allocation3 + $0x358] sm:$0xff] }
 0x472   :  { %1262 = vmatpush1.bf16.msra.mxu0 %v1134_v7  ;;  %1272 = vmatprep.subr.bf16.mxu1 %v889_v8  ;;  %v995_v7 = vld [vmem:[#allocation3 + $0x368] sm:$0xff]  ;;  %v992_v8 = vld [vmem:[#allocation3 + $0x350] sm:$0xff] }
 0x473   :  { %1354 = vmatprep.subr.bf16.mxu0 %v891_v9  ;;  %v994_v9 = vld [vmem:[#allocation3 + $0x360] sm:$0xff] }
 0x474   :  { %1223 = vmatmul.mubr.bf16.vlgmr.msra.gmra.mrb[12].mxu1 %v2904_v10 }
 0x475   :  { %1264 = vmatmul.mubr.bf16.vlgmr.msra.gmra.mrb[4].mxu0 %v2908_v11  ;;  %1273 = vmatpush1.bf16.msra.mxu1 %v888_v46  ;;  %v1001_v46 = vld [vmem:[#allocation3 + $0x398] sm:$0xff] }
 0x476   :  { %1355 = vmatpush1.bf16.msra.mxu0 %v890_v12  ;;  %1274 = vmatprep.subr.bf16.mxu1 %v897_v13  ;;  %v1003_v12 = vld [vmem:[#allocation3 + $0x3a8] sm:$0xff]  ;;  %v1000_v13 = vld [vmem:[#allocation3 + $0x390] sm:$0xff] }
 0x477   :  { %1356 = vmatprep.subr.bf16.mxu0 %v899_v14  ;;  %1304 = vmatprep.mubr.bf16.mxu1 %v2896_v61  ;;  %v1002_v14 = vld [vmem:[#allocation3 + $0x3a0] sm:$0xff] }
 0x478   :  { %1386 = vmatprep.mubr.bf16.mxu0 %v2896_v61 }
 0x479   :  { %1275 = vmatpush1.bf16.msra.mxu1 %v896_v50  ;;  %v1009_v50 = vld [vmem:[#allocation3 + $0x3d8] sm:$0xff] }
 0x47a   :  { %1357 = vmatpush1.bf16.msra.mxu0 %v898_v15  ;;  %1276 = vmatprep.subr.bf16.mxu1 %v905_v60  ;;  %v1011_v15 = vld [vmem:[#allocation3 + $0x3e8] sm:$0xff]  ;;  %v1008_v60 = vld [vmem:[#allocation3 + $0x3d0] sm:$0xff] }
 0x47b   :  { %1358 = vmatprep.subr.bf16.mxu0 %v907_v16  ;;  %v1010_v16 = vld [vmem:[#allocation3 + $0x3e0] sm:$0xff] }
 0x47d   :  { %1277 = vmatpush1.bf16.msra.mxu1 %v904_v17  ;;  %v1017_v17 = vld [vmem:[#allocation3 + $0x418] sm:$0xff] }
 0x47e   :  { %1359 = vmatpush1.bf16.msra.mxu0 %v906_v18  ;;  %1278 = vmatprep.subr.bf16.mxu1 %v913_v19  ;;  %v1019_v18 = vld [vmem:[#allocation3 + $0x428] sm:$0xff]  ;;  %v1016_v19 = vld [vmem:[#allocation3 + $0x410] sm:$0xff] }
 0x47f   :  { %1360 = vmatprep.subr.bf16.mxu0 %v915_v20  ;;  %v1018_v20 = vld [vmem:[#allocation3 + $0x420] sm:$0xff] }
 0x481   :  { %1279 = vmatpush1.bf16.msra.mxu1 %v912_v21  ;;  %v1025_v21 = vld [vmem:[#allocation3 + $0x458] sm:$0xff] }
 0x482   :  { %1361 = vmatpush1.bf16.msra.mxu0 %v914_v22  ;;  %1280 = vmatprep.subr.bf16.mxu1 %v921_v23  ;;  %v1027_v22 = vld [vmem:[#allocation3 + $0x468] sm:$0xff]  ;;  %v1024_v23 = vld [vmem:[#allocation3 + $0x450] sm:$0xff] }
 0x483   :  { %1362 = vmatprep.subr.bf16.mxu0 %v923_v24  ;;  %v1026_v24 = vld [vmem:[#allocation3 + $0x460] sm:$0xff] }
 0x485   :  { %1281 = vmatpush1.bf16.msra.mxu1 %v920_v25  ;;  %v1033_v25 = vld [vmem:[#allocation3 + $0x498] sm:$0xff] }
 0x486   :  { %1363 = vmatpush1.bf16.msra.mxu0 %v922_v26  ;;  %1282 = vmatprep.subr.bf16.mxu1 %v929_v27  ;;  %v1035_v26 = vld [vmem:[#allocation3 + $0x4a8] sm:$0xff]  ;;  %v1032_v27 = vld [vmem:[#allocation3 + $0x490] sm:$0xff] }
 0x487   :  { %1364 = vmatprep.subr.bf16.mxu0 %v931_v30  ;;  %v1034_v30 = vld [vmem:[#allocation3 + $0x4a0] sm:$0xff] }
 0x489   :  { %1283 = vmatpush1.bf16.msra.mxu1 %v928_v31  ;;  %v1041_v31 = vld [vmem:[#allocation3 + $0x4d8] sm:$0xff] }
 0x48a   :  { %1365 = vmatpush1.bf16.msra.mxu0 %v930_v34  ;;  %1284 = vmatprep.subr.bf16.mxu1 %v937_v36  ;;  %v1043_v34 = vld [vmem:[#allocation3 + $0x4e8] sm:$0xff]  ;;  %v1040_v36 = vld [vmem:[#allocation3 + $0x4d0] sm:$0xff] }
 0x48b   :  { %1366 = vmatprep.subr.bf16.mxu0 %v939_v37  ;;  %v1042_v37 = vld [vmem:[#allocation3 + $0x4e0] sm:$0xff] }
 0x48d   :  { %1285 = vmatpush1.bf16.msra.mxu1 %v936_v38  ;;  %v1049_v38 = vld [vmem:[#allocation3 + $0x518] sm:$0xff] }
 0x48e   :  { %1367 = vmatpush1.bf16.msra.mxu0 %v938_v39  ;;  %1286 = vmatprep.subr.bf16.mxu1 %v945_v40  ;;  %v1051_v39 = vld [vmem:[#allocation3 + $0x528] sm:$0xff]  ;;  %v1048_v40 = vld [vmem:[#allocation3 + $0x510] sm:$0xff] }
 0x48f   :  { %1368 = vmatprep.subr.bf16.mxu0 %v947_v41  ;;  %v1050_v41 = vld [vmem:[#allocation3 + $0x520] sm:$0xff] }
 0x491   :  { %1287 = vmatpush1.bf16.msra.mxu1 %v944_v42  ;;  %v1057_v42 = vld [vmem:[#allocation3 + $0x558] sm:$0xff] }
 0x492   :  { %1369 = vmatpush1.bf16.msra.mxu0 %v946_v43  ;;  %1288 = vmatprep.subr.bf16.mxu1 %v953_v44  ;;  %v1059_v43 = vld [vmem:[#allocation3 + $0x568] sm:$0xff]  ;;  %v1056_v44 = vld [vmem:[#allocation3 + $0x550] sm:$0xff] }
 0x493   :  { %1370 = vmatprep.subr.bf16.mxu0 %v955_v45  ;;  %v1058_v45 = vld [vmem:[#allocation3 + $0x560] sm:$0xff] }
 0x495   :  { %1289 = vmatpush1.bf16.msra.mxu1 %v952_v47  ;;  %v1065_v47 = vld [vmem:[#allocation3 + $0x598] sm:$0xff] }
 0x496   :  { %1371 = vmatpush1.bf16.msra.mxu0 %v954_v48  ;;  %1290 = vmatprep.subr.bf16.mxu1 %v961_v49  ;;  %v1067_v48 = vld [vmem:[#allocation3 + $0x5a8] sm:$0xff]  ;;  %v1064_v49 = vld [vmem:[#allocation3 + $0x590] sm:$0xff] }
 0x497   :  { %1372 = vmatprep.subr.bf16.mxu0 %v963_v54  ;;  %v1066_v54 = vld [vmem:[#allocation3 + $0x5a0] sm:$0xff] }
 0x499   :  { %1291 = vmatpush1.bf16.msra.mxu1 %v960_v55  ;;  %v1073_v55 = vld [vmem:[#allocation3 + $0x5d8] sm:$0xff] }
 0x49a   :  { %1373 = vmatpush1.bf16.msra.mxu0 %v962_v56  ;;  %1292 = vmatprep.subr.bf16.mxu1 %v969_v57  ;;  %v1075_v56 = vld [vmem:[#allocation3 + $0x5e8] sm:$0xff]  ;;  %v1072_v57 = vld [vmem:[#allocation3 + $0x5d0] sm:$0xff] }
 0x49b   :  { %1374 = vmatprep.subr.bf16.mxu0 %v971_v58  ;;  %v1074_v58 = vld [vmem:[#allocation3 + $0x5e0] sm:$0xff] }
 0x49d   :  { %1293 = vmatpush1.bf16.msra.mxu1 %v968_v59  ;;  %v1081_v59 = vld [vmem:[#allocation3 + $0x618] sm:$0xff] }
 0x49e   :  { %1375 = vmatpush1.bf16.msra.mxu0 %v970_v28  ;;  %1294 = vmatprep.subr.bf16.mxu1 %v977_v29  ;;  %v1083_v28 = vld [vmem:[#allocation3 + $0x628] sm:$0xff]  ;;  %v1080_v29 = vld [vmem:[#allocation3 + $0x610] sm:$0xff] }
 0x49f   :  { %1376 = vmatprep.subr.bf16.mxu0 %v979_v63  ;;  %v1082_v63 = vld [vmem:[#allocation3 + $0x620] sm:$0xff] }
 0x4a1   :  { %1295 = vmatpush1.bf16.msra.mxu1 %v976_v1  ;;  %v1089_v1 = vld [vmem:[#allocation3 + $0x658] sm:$0xff] }
 0x4a2   :  { %1377 = vmatpush1.bf16.msra.mxu0 %v978_v2  ;;  %1296 = vmatprep.subr.bf16.mxu1 %v985_v3  ;;  %v1091_v2 = vld [vmem:[#allocation3 + $0x668] sm:$0xff]  ;;  %v1088_v3 = vld [vmem:[#allocation3 + $0x650] sm:$0xff] }
 0x4a3   :  { %1378 = vmatprep.subr.bf16.mxu0 %v987_v4  ;;  %v1090_v4 = vld [vmem:[#allocation3 + $0x660] sm:$0xff] }
 0x4a5   :  { %1297 = vmatpush1.bf16.msra.mxu1 %v984_v5  ;;  %v1097_v5 = vld [vmem:[#allocation3 + $0x698] sm:$0xff] }
 0x4a6   :  { %1379 = vmatpush1.bf16.msra.mxu0 %v986_v51  ;;  %1298 = vmatprep.subr.bf16.mxu1 %v993_v6  ;;  %v1099_v51 = vld [vmem:[#allocation3 + $0x6a8] sm:$0xff]  ;;  %v1096_v6 = vld [vmem:[#allocation3 + $0x690] sm:$0xff] }
 0x4a7   :  { %1380 = vmatprep.subr.bf16.mxu0 %v995_v7  ;;  %v1098_v7 = vld [vmem:[#allocation3 + $0x6a0] sm:$0xff] }
 0x4a9   :  { %1299 = vmatpush1.bf16.msra.mxu1 %v992_v8  ;;  %v1105_v8 = vld [vmem:[#allocation3 + $0x6d8] sm:$0xff] }
 0x4aa   :  { %1381 = vmatpush1.bf16.msra.mxu0 %v994_v9  ;;  %1300 = vmatprep.subr.bf16.mxu1 %v1001_v46  ;;  %v1107_v9 = vld [vmem:[#allocation3 + $0x6e8] sm:$0xff]  ;;  %v1104_v46 = vld [vmem:[#allocation3 + $0x6d0] sm:$0xff] }
 0x4ab   :  { %1382 = vmatprep.subr.bf16.mxu0 %v1003_v12  ;;  %v1106_v12 = vld [vmem:[#allocation3 + $0x6e0] sm:$0xff] }
 0x4ad   :  { %1301 = vmatpush1.bf16.msra.mxu1 %v1000_v13  ;;  %v1113_v13 = vld [vmem:[#allocation3 + $0x718] sm:$0xff] }
 0x4ae   :  { %1383 = vmatpush1.bf16.msra.mxu0 %v1002_v14  ;;  %1302 = vmatprep.subr.bf16.mxu1 %v1009_v50  ;;  %v1115_v14 = vld [vmem:[#allocation3 + $0x728] sm:$0xff]  ;;  %v1112_v50 = vld [vmem:[#allocation3 + $0x710] sm:$0xff] }
 0x4af   :  { %1384 = vmatprep.subr.bf16.mxu0 %v1011_v15  ;;  %v1114_v15 = vld [vmem:[#allocation3 + $0x720] sm:$0xff] }
 0x4b1   :  { %1303 = vmatpush1.bf16.msra.mxu1 %v1008_v60  ;;  %v1121_v60 = vld [vmem:[#allocation3 + $0x758] sm:$0xff] }
 0x4b2   :  { %1385 = vmatpush1.bf16.msra.mxu0 %v1010_v16  ;;  %1313 = vmatprep.subr.bf16.mxu1 %v1017_v17  ;;  %v1123_v16 = vld [vmem:[#allocation3 + $0x768] sm:$0xff]  ;;  %v1120_v17 = vld [vmem:[#allocation3 + $0x750] sm:$0xff] }
 0x4b3   :  { %1395 = vmatprep.subr.bf16.mxu0 %v1019_v18  ;;  %v1122_v18 = vld [vmem:[#allocation3 + $0x760] sm:$0xff] }
 0x4b4   :  { %1305 = vmatmul.mubr.bf16.vlgmr.msra.gmra.mrb[16].mxu1 %v2904_v10 }
 0x4b5   :  { %1387 = vmatmul.mubr.bf16.vlgmr.msra.gmra.mrb[8].mxu0 %v2904_v10  ;;  %1314 = vmatpush1.bf16.msra.mxu1 %v1016_v19  ;;  %v1129_v19 = vld [vmem:[#allocation3 + $0x798] sm:$0xff] }
 0x4b6   :  { %1396 = vmatpush1.bf16.msra.mxu0 %v1018_v20  ;;  %1315 = vmatprep.subr.bf16.mxu1 %v1025_v21  ;;  %v1131_v20 = vld [vmem:[#allocation3 + $0x7a8] sm:$0xff]  ;;  %v1128_v21 = vld [vmem:[#allocation3 + $0x790] sm:$0xff] }
 0x4b7   :  { %1397 = vmatprep.subr.bf16.mxu0 %v1027_v22  ;;  %1345 = vmatprep.mubr.bf16.mxu1 %v2898_v62  ;;  %v1130_v22 = vld [vmem:[#allocation3 + $0x7a0] sm:$0xff] }
 0x4b8   :  { %1427 = vmatprep.mubr.bf16.mxu0 %v2898_v62 }
 0x4b9   :  { %1316 = vmatpush1.bf16.msra.mxu1 %v1024_v23  ;;  %v1137_v23 = vld [vmem:[#allocation3 + $0x7d8] sm:$0xff] }
 0x4ba   :  { %1398 = vmatpush1.bf16.msra.mxu0 %v1026_v24  ;;  %1317 = vmatprep.subr.bf16.mxu1 %v1033_v25  ;;  %v1139_v24 = vld [vmem:[#allocation3 + $0x7e8] sm:$0xff]  ;;  %v1136_v25 = vld [vmem:[#allocation3 + $0x7d0] sm:$0xff] }
 0x4bb   :  { %1399 = vmatprep.subr.bf16.mxu0 %v1035_v26  ;;  %v1138_v26 = vld [vmem:[#allocation3 + $0x7e0] sm:$0xff] }
 0x4bd   :  { %1318 = vmatpush1.bf16.msra.mxu1 %v1032_v27  ;;  %v893_v27 = vld [vmem:[#allocation3 + $0x38] sm:$0xff] }
 0x4be   :  { %1400 = vmatpush1.bf16.msra.mxu0 %v1034_v30  ;;  %1319 = vmatprep.subr.bf16.mxu1 %v1041_v31  ;;  %v892_v30 = vld [vmem:[#allocation3 + $0x30] sm:$0xff]  ;;  %v901_v31 = vld [vmem:[#allocation3 + $0x78] sm:$0xff] }
 0x4bf   :  { %1401 = vmatprep.subr.bf16.mxu0 %v1043_v34  ;;  %v900_v34 = vld [vmem:[#allocation3 + $0x70] sm:$0xff] }
 0x4c1   :  { %1320 = vmatpush1.bf16.msra.mxu1 %v1040_v36  ;;  %v909_v36 = vld [vmem:[#allocation3 + $0xb8] sm:$0xff] }
 0x4c2   :  { %1402 = vmatpush1.bf16.msra.mxu0 %v1042_v37  ;;  %1321 = vmatprep.subr.bf16.mxu1 %v1049_v38  ;;  %v908_v37 = vld [vmem:[#allocation3 + $0xb0] sm:$0xff]  ;;  %v917_v38 = vld [vmem:[#allocation3 + $0xf8] sm:$0xff] }
 0x4c3   :  { %1403 = vmatprep.subr.bf16.mxu0 %v1051_v39  ;;  %v916_v39 = vld [vmem:[#allocation3 + $0xf0] sm:$0xff] }
 0x4c5   :  { %1322 = vmatpush1.bf16.msra.mxu1 %v1048_v40  ;;  %v925_v40 = vld [vmem:[#allocation3 + $0x138] sm:$0xff] }
 0x4c6   :  { %1404 = vmatpush1.bf16.msra.mxu0 %v1050_v41  ;;  %1323 = vmatprep.subr.bf16.mxu1 %v1057_v42  ;;  %v924_v41 = vld [vmem:[#allocation3 + $0x130] sm:$0xff]  ;;  %v933_v42 = vld [vmem:[#allocation3 + $0x178] sm:$0xff] }
 0x4c7   :  { %1405 = vmatprep.subr.bf16.mxu0 %v1059_v43  ;;  %v932_v43 = vld [vmem:[#allocation3 + $0x170] sm:$0xff] }
 0x4c9   :  { %1324 = vmatpush1.bf16.msra.mxu1 %v1056_v44  ;;  %v941_v44 = vld [vmem:[#allocation3 + $0x1b8] sm:$0xff] }
 0x4ca   :  { %1406 = vmatpush1.bf16.msra.mxu0 %v1058_v45  ;;  %1325 = vmatprep.subr.bf16.mxu1 %v1065_v47  ;;  %v949_v45 = vld [vmem:[#allocation3 + $0x1f8] sm:$0xff]  ;;  %v948_v47 = vld [vmem:[#allocation3 + $0x1f0] sm:$0xff] }
 0x4cb   :  { %1407 = vmatprep.subr.bf16.mxu0 %v1067_v48  ;;  %v957_v48 = vld [vmem:[#allocation3 + $0x238] sm:$0xff] }
 0x4cd   :  { %1326 = vmatpush1.bf16.msra.mxu1 %v1064_v49  ;;  %v956_v49 = vld [vmem:[#allocation3 + $0x230] sm:$0xff] }
 0x4ce   :  { %1408 = vmatpush1.bf16.msra.mxu0 %v1066_v54  ;;  %1327 = vmatprep.subr.bf16.mxu1 %v1073_v55  ;;  %v965_v54 = vld [vmem:[#allocation3 + $0x278] sm:$0xff]  ;;  %v964_v55 = vld [vmem:[#allocation3 + $0x270] sm:$0xff] }
 0x4cf   :  { %1409 = vmatprep.subr.bf16.mxu0 %v1075_v56  ;;  %v973_v56 = vld [vmem:[#allocation3 + $0x2b8] sm:$0xff] }
 0x4d1   :  { %1328 = vmatpush1.bf16.msra.mxu1 %v1072_v57  ;;  %v972_v57 = vld [vmem:[#allocation3 + $0x2b0] sm:$0xff] }
 0x4d2   :  { %1410 = vmatpush1.bf16.msra.mxu0 %v1074_v58  ;;  %1329 = vmatprep.subr.bf16.mxu1 %v1081_v59  ;;  %v981_v58 = vld [vmem:[#allocation3 + $0x2f8] sm:$0xff]  ;;  %v980_v59 = vld [vmem:[#allocation3 + $0x2f0] sm:$0xff] }
 0x4d3   :  { %1411 = vmatprep.subr.bf16.mxu0 %v1083_v28  ;;  %v989_v28 = vld [vmem:[#allocation3 + $0x338] sm:$0xff] }
 0x4d5   :  { %1330 = vmatpush1.bf16.msra.mxu1 %v1080_v29  ;;  %v988_v29 = vld [vmem:[#allocation3 + $0x330] sm:$0xff] }
 0x4d6   :  { %1412 = vmatpush1.bf16.msra.mxu0 %v1082_v63  ;;  %1331 = vmatprep.subr.bf16.mxu1 %v1089_v1  ;;  %v997_v63 = vld [vmem:[#allocation3 + $0x378] sm:$0xff]  ;;  %v996_v1 = vld [vmem:[#allocation3 + $0x370] sm:$0xff] }
 0x4d7   :  { %1413 = vmatprep.subr.bf16.mxu0 %v1091_v2  ;;  %v1005_v2 = vld [vmem:[#allocation3 + $0x3b8] sm:$0xff] }
 0x4d9   :  { %1332 = vmatpush1.bf16.msra.mxu1 %v1088_v3  ;;  %v1004_v3 = vld [vmem:[#allocation3 + $0x3b0] sm:$0xff] }
 0x4da   :  { %1414 = vmatpush1.bf16.msra.mxu0 %v1090_v4  ;;  %1333 = vmatprep.subr.bf16.mxu1 %v1097_v5  ;;  %v1013_v4 = vld [vmem:[#allocation3 + $0x3f8] sm:$0xff]  ;;  %v1012_v5 = vld [vmem:[#allocation3 + $0x3f0] sm:$0xff] }
 0x4db   :  { %1415 = vmatprep.subr.bf16.mxu0 %v1099_v51  ;;  %v1021_v51 = vld [vmem:[#allocation3 + $0x438] sm:$0xff] }
 0x4dd   :  { %1334 = vmatpush1.bf16.msra.mxu1 %v1096_v6  ;;  %v1020_v6 = vld [vmem:[#allocation3 + $0x430] sm:$0xff] }
 0x4de   :  { %1416 = vmatpush1.bf16.msra.mxu0 %v1098_v7  ;;  %1335 = vmatprep.subr.bf16.mxu1 %v1105_v8  ;;  %v1029_v7 = vld [vmem:[#allocation3 + $0x478] sm:$0xff]  ;;  %v1028_v8 = vld [vmem:[#allocation3 + $0x470] sm:$0xff] }
 0x4df   :  { %1417 = vmatprep.subr.bf16.mxu0 %v1107_v9  ;;  %v1037_v9 = vld [vmem:[#allocation3 + $0x4b8] sm:$0xff] }
 0x4e1   :  { %1336 = vmatpush1.bf16.msra.mxu1 %v1104_v46  ;;  %v1036_v46 = vld [vmem:[#allocation3 + $0x4b0] sm:$0xff] }
 0x4e2   :  { %1418 = vmatpush1.bf16.msra.mxu0 %v1106_v12  ;;  %1337 = vmatprep.subr.bf16.mxu1 %v1113_v13  ;;  %v1045_v12 = vld [vmem:[#allocation3 + $0x4f8] sm:$0xff]  ;;  %v1044_v13 = vld [vmem:[#allocation3 + $0x4f0] sm:$0xff] }
 0x4e3   :  { %1419 = vmatprep.subr.bf16.mxu0 %v1115_v14  ;;  %v1053_v14 = vld [vmem:[#allocation3 + $0x538] sm:$0xff] }
 0x4e5   :  { %1338 = vmatpush1.bf16.msra.mxu1 %v1112_v50  ;;  %v2926_v50 = vld [vmem:[%s3079_s12] sm:$0xff] }
 0x4e6   :  { %1420 = vmatpush1.bf16.msra.mxu0 %v1114_v15  ;;  %1339 = vmatprep.subr.bf16.mxu1 %v1121_v60  ;;  %v1153_v15 = vrot.slane %v2926_v50, %v2826_v33  ;;  %v1157_v60 = vrot.slane %v2926_v50, %v2829_v35 }
 0x4e7   :  { %1421 = vmatprep.subr.bf16.mxu0 %v1123_v16  ;;  %v1060_v16 = vld [vmem:[#allocation3 + $0x570] sm:$0xff] }
 0x4e9   :  { %1340 = vmatpush1.bf16.msra.mxu1 %v1120_v17 }
 0x4ea   :  { %1422 = vmatpush1.bf16.msra.mxu0 %v1122_v18  ;;  %1341 = vmatprep.subr.bf16.mxu1 %v1129_v19  ;;  %v1069_v19 = vld [vmem:[#allocation3 + $0x5b8] sm:$0xff] }
 0x4eb   :  { %1423 = vmatprep.subr.bf16.mxu0 %v1131_v20 }
 0x4ed   :  { %1342 = vmatpush1.bf16.msra.mxu1 %v1128_v21 }
 0x4ee   :  { %1424 = vmatpush1.bf16.msra.mxu0 %v1130_v22  ;;  %1343 = vmatprep.subr.bf16.mxu1 %v1137_v23 }
 0x4ef   :  { %1425 = vmatprep.subr.bf16.mxu0 %v1139_v24 }
 0x4f1   :  { %1344 = vmatpush1.bf16.msra.mxu1 %v1136_v25 }
 0x4f2   :  { %1426 = vmatpush1.bf16.msra.mxu0 %v1138_v26  ;;  %1436 = vmatprep.subr.bf16.mxu1 %v893_v27 }
 0x4f4   :  { %1346 = vmatmul.mubr.bf16.vlgmr.msra.gmra.mrb[16].mxu1 %v2908_v11 }
 0x4f5   :  { %1428 = vmatmul.mubr.bf16.vlgmr.msra.gmra.mrb[8].mxu0 %v2908_v11  ;;  %1437 = vmatpush1.bf16.msra.mxu1 %v892_v30  ;;  %v1068_v30 = vld [vmem:[#allocation3 + $0x5b0] sm:$0xff] }
 0x4f6   :  { %1468 = vmatprep.mubr.bf16.mxu1 %v2896_v61  ;;  %1438 = vmatprep.subr.bf16.mxu1 %v901_v31  ;;  %v940_v61 = vld [vmem:[#allocation3 + $0x1b0] sm:$0xff] }
 0x4f9   :  { %1439 = vmatpush1.bf16.msra.mxu1 %v900_v34 }
 0x4fa   :  { %1440 = vmatprep.subr.bf16.mxu1 %v909_v36  ;;  %v1077_v36 = vld [vmem:[#allocation3 + $0x5f8] sm:$0xff] }
 0x4fd   :  { %1441 = vmatpush1.bf16.msra.mxu1 %v908_v37 }
 0x4fe   :  { %1442 = vmatprep.subr.bf16.mxu1 %v917_v38 }
 0x501   :  { %1443 = vmatpush1.bf16.msra.mxu1 %v916_v39 }
 0x502   :  { %1444 = vmatprep.subr.bf16.mxu1 %v925_v40 }
 0x505   :  { %1445 = vmatpush1.bf16.msra.mxu1 %v924_v41 }
 0x506   :  { %1446 = vmatprep.subr.bf16.mxu1 %v933_v42 }
 0x509   :  { %1447 = vmatpush1.bf16.msra.mxu1 %v932_v43  ;;  %v1076_v43 = vld [vmem:[#allocation3 + $0x5f0] sm:$0xff] }
 0x50a   :  { %1448 = vmatprep.subr.bf16.mxu1 %v941_v44 }
 0x50d   :  { %1449 = vmatpush1.bf16.msra.mxu1 %v940_v61 }
 0x50e   :  { %1450 = vmatprep.subr.bf16.mxu1 %v949_v45  ;;  %v1085_v45 = vld [vmem:[#allocation3 + $0x638] sm:$0xff] }
 0x511   :  { %1451 = vmatpush1.bf16.msra.mxu1 %v948_v47 }
 0x512   :  { %1452 = vmatprep.subr.bf16.mxu1 %v957_v48 }
 0x515   :  { %1453 = vmatpush1.bf16.msra.mxu1 %v956_v49 }
 0x516   :  { %1454 = vmatprep.subr.bf16.mxu1 %v965_v54 }
 0x519   :  { %1455 = vmatpush1.bf16.msra.mxu1 %v964_v55 }
 0x51a   :  { %1456 = vmatprep.subr.bf16.mxu1 %v973_v56 }
 0x51d   :  { %1457 = vmatpush1.bf16.msra.mxu1 %v972_v57  ;;  %v1084_v57 = vld [vmem:[#allocation3 + $0x630] sm:$0xff] }
 0x51e   :  { %1458 = vmatprep.subr.bf16.mxu1 %v981_v58 }
 0x521   :  { %1459 = vmatpush1.bf16.msra.mxu1 %v980_v59 }
 0x522   :  { %1460 = vmatprep.subr.bf16.mxu1 %v989_v28  ;;  %v1093_v28 = vld [vmem:[#allocation3 + $0x678] sm:$0xff] }
 0x525   :  { %1461 = vmatpush1.bf16.msra.mxu1 %v988_v29 }
 0x526   :  { %1462 = vmatprep.subr.bf16.mxu1 %v997_v63 }
 0x529   :  { %1463 = vmatpush1.bf16.msra.mxu1 %v996_v1 }
 0x52a   :  { %1464 = vmatprep.subr.bf16.mxu1 %v1005_v2 }
 0x52d   :  { %1465 = vmatpush1.bf16.msra.mxu1 %v1004_v3 }
 0x52e   :  { %1466 = vmatprep.subr.bf16.mxu1 %v1013_v4 }
 0x531   :  { %1467 = vmatpush1.bf16.msra.mxu1 %v1012_v5  ;;  %v1092_v5 = vld [vmem:[#allocation3 + $0x670] sm:$0xff] }
 0x532   :  { %1477 = vmatprep.subr.bf16.mxu1 %v1021_v51 }
 0x534   :  { %1469 = vmatmul.mubr.bf16.vlgmr.msra.gmra.mrb[20].mxu1 %v2904_v10  ;;  %v1052_v10 = vld [vmem:[#allocation3 + $0x530] sm:$0xff] }
 0x535   :  { %1478 = vmatpush1.bf16.msra.mxu1 %v1020_v6  ;;  %1509 = vmatprep.mubr.bf16.mxu1 %v2898_v62  ;;  %v1061_v62 = vld [vmem:[#allocation3 + $0x578] sm:$0xff] }
 0x536   :  { %1479 = vmatprep.subr.bf16.mxu1 %v1029_v7  ;;  %v1101_v7 = vld [vmem:[#allocation3 + $0x6b8] sm:$0xff] }
 0x539   :  { %1480 = vmatpush1.bf16.msra.mxu1 %v1028_v8 }
 0x53a   :  { %1481 = vmatprep.subr.bf16.mxu1 %v1037_v9 }
 0x53d   :  { %1482 = vmatpush1.bf16.msra.mxu1 %v1036_v46 }
 0x53e   :  { %1483 = vmatprep.subr.bf16.mxu1 %v1045_v12 }
 0x541   :  { %1484 = vmatpush1.bf16.msra.mxu1 %v1044_v13 }
 0x542   :  { %1485 = vmatprep.subr.bf16.mxu1 %v1053_v14 }
 0x545   :  { %1486 = vmatpush1.bf16.msra.mxu1 %v1052_v10  ;;  %v1100_v10 = vld [vmem:[#allocation3 + $0x6b0] sm:$0xff] }
 0x546   :  { %1487 = vmatprep.subr.bf16.mxu1 %v1061_v62 }
 0x547   :  { %v1224_v17 = vpop.f32.mrb[12].mxu1 }
 0x548   :  { %v1265_v18 = vpop.f32.mrb[4].mxu0  ;;  %v1225_v20 = vadd.f32 %v1224_v17, %v1153_v15  ;;  %v1226_v21 = vpop.f32.mrb[13].mxu1 }
 0x549   :  { %v1267_v22 = vpop.f32.mrb[5].mxu0  ;;  %v1227_v23 = vadd.f32 %v1226_v21, %v1157_v60  ;;  %v1228_v24 = vpop.f32.mrb[14].mxu1  ;;  %1488 = vmatpush1.bf16.msra.mxu1 %v1060_v16  ;;  %v1109_v60 = vld [vmem:[#allocation3 + $0x6f8] sm:$0xff] }
 0x54a   :  { %v1269_v25 = vpop.f32.mrb[6].mxu0  ;;  %v2932_v26 = vadd.f32 %v1265_v18, %v1225_v20  ;;  %v1229_v27 = vpop.f32.mrb[15].mxu1  ;;  %1489 = vmatprep.subr.bf16.mxu1 %v1069_v19  ;;  %v1108_v19 = vld [vmem:[#allocation3 + $0x6f0] sm:$0xff]  ;;  %v1117_v21 = vld [vmem:[#allocation3 + $0x738] sm:$0xff]  ;;  %v2947_v24 = vld [vmem:[%s3080_s13] sm:$0xff] }
 0x54b   :  { %v1270_v31 = vpop.f32.mrb[7].mxu0  ;;  %v2934_v34 = vadd.f32 %v1267_v22, %v1227_v23  ;;  %v1116_v22 = vld [vmem:[#allocation3 + $0x730] sm:$0xff]  ;;  %v1125_v23 = vld [vmem:[#allocation3 + $0x778] sm:$0xff] }
 0x54c   :  { %v1518_v37 = vrot.slane %v2932_v26, 4  ;;  %v1566_v38 = vmul.f32 %v2932_v26, %v2932_v26  ;;  %v1124_v25 = vld [vmem:[#allocation3 + $0x770] sm:$0xff]  ;;  %v1133_v27 = vld [vmem:[#allocation3 + $0x7b8] sm:$0xff] }
 0x54d   :  { %v1524_v39 = vrot.slane %v2934_v34, 4  ;;  %v1567_v40 = vmul.f32 %v2934_v34, %v2934_v34  ;;  %1490 = vmatpush1.bf16.msra.mxu1 %v1068_v30  ;;  %v2949_v30 = vld [vmem:[#allocation17] sm:$0xff] }
 0x54e   :  { %v1519_v41 = vadd.f32 %v1518_v37, %v2932_v26  ;;  %v1574_v42 = vrot.slane %v1566_v38, 4  ;;  %1491 = vmatprep.subr.bf16.mxu1 %v1077_v36  ;;  %v1690_v36 = vrot.slane %v2947_v24, %v2826_v33 }
 0x54f   :  { %v1525_v44 = vadd.f32 %v1524_v39, %v2934_v34  ;;  %v1580_v61 = vrot.slane %v1567_v40, 4  ;;  %v1694_v39 = vrot.slane %v2947_v24, %v2829_v35 }
 0x550   :  { %v1520_v47 = vrot.slane %v1519_v41, 2  ;;  %v1575_v48 = vadd.f32 %v1574_v42, %v1566_v38 }
 0x551   :  { %v1526_v49 = vrot.slane %v1525_v44, 2  ;;  %v1581_v54 = vadd.f32 %v1580_v61, %v1567_v40  ;;  %1492 = vmatpush1.bf16.msra.mxu1 %v1076_v43  ;;  %v1132_v40 = vld [vmem:[#allocation3 + $0x7b0] sm:$0xff]  ;;  %v1739_v43 = vrot.slane %v2949_v30, %v2826_v33 }
 0x552   :  { %v1521_v55 = vadd.f32 %v1520_v47, %v1519_v41  ;;  %v1576_v56 = vrot.slane %v1575_v48, 2  ;;  %1493 = vmatprep.subr.bf16.mxu1 %v1085_v45 }
 0x553   :  { %v1527_v58 = vadd.f32 %v1526_v49, %v1525_v44  ;;  %v1582_v59 = vrot.slane %v1581_v54, 2  ;;  %v1141_v44 = vld [vmem:[#allocation3 + $0x7f8] sm:$0xff] }
 0x554   :  { %v1522_v29 = vrot.slane %v1521_v55, 1  ;;  %v1577_v63 = vadd.f32 %v1576_v56, %v1575_v48 }
 0x555   :  { %v1528_v1 = vrot.slane %v1527_v58, 1  ;;  %v1583_v2 = vadd.f32 %v1582_v59, %v1581_v54  ;;  %1494 = vmatpush1.bf16.msra.mxu1 %v1084_v57  ;;  %v2970_v59 = vsub.s32 5, %v2823_v32 }
 0x556   :  { %v1523_v3 = vadd.f32 %v1522_v29, %v1521_v55  ;;  %v1578_v4 = vrot.slane %v1577_v63, 1  ;;  %1495 = vmatprep.subr.bf16.mxu1 %v1093_v28  ;;  %v1161_v28 = vrot.slane %v2926_v50, %v2875_v52 }
 0x557   :  { %v1529_v51 = vadd.f32 %v1528_v1, %v1527_v58  ;;  %v1584_v6 = vrot.slane %v1583_v2, 1  ;;  %v2967_v58 = vsub.s32 4, %v2823_v32  ;;  %v1173_v1 = vrot.slane %v2926_v50, %v2970_v59 }
 0x558   :  { %v1579_v8 = vadd.f32 %v1578_v4, %v1577_v63  ;;  %v1622_v9 = vmul.f32 0.125, %v1523_v3  ;;  %v1165_v63 = vrot.slane %v2926_v50, %v2878_v53 }
 0x559   :  { %v1585_v46 = vadd.f32 %v1584_v6, %v1583_v2  ;;  %v1623_v12 = vmul.f32 0.125, %v1529_v51  ;;  %1496 = vmatpush1.bf16.msra.mxu1 %v1092_v5  ;;  %v1169_v29 = vrot.slane %v2926_v50, %v2967_v58 }
 0x55a   :  { %v1630_v13 = vmul.f32 0.125, %v1579_v8  ;;  %v1638_v14 = vmul.f32 %v1622_v9, %v1622_v9  ;;  %1497 = vmatprep.subr.bf16.mxu1 %v1101_v7  ;;  %v1654_v31 = vsub.f32 %v2932_v26, %v1622_v9  ;;  %v1743_v26 = vrot.slane %v2949_v30, %v2829_v35 }
 0x55b   :  { %v1631_v62 = vmul.f32 0.125, %v1585_v46  ;;  %v1639_v15 = vmul.f32 %v1623_v12, %v1623_v12  ;;  %v1655_v38 = vsub.f32 %v2934_v34, %v1623_v12  ;;  %v1140_v34 = vld [vmem:[#allocation3 + $0x7f0] sm:$0xff] }
 0x55c   :  { %v1646_v16 = vsub.f32 %v1630_v13, %v1638_v14 }
 0x55d   :  { %v1647_v17 = vsub.f32 %v1631_v62, %v1639_v15  ;;  %1498 = vmatpush1.bf16.msra.mxu1 %v1100_v10 }
 0x55e   :  { %v1662_v18 = vadd.f32 0.8, %v1646_v16  ;;  %1499 = vmatprep.subr.bf16.mxu1 %v1109_v60 }
 0x55f   :  { %v1663_v20 = vadd.f32 0.8, %v1647_v17 }
 0x560   :  { %2315 = vrsqrt.f32 %v1662_v18 }
 0x561   :  { %2317 = vrsqrt.f32 %v1663_v20  ;;  %1500 = vmatpush1.bf16.msra.mxu1 %v1108_v19 }
 0x562   :  { %1501 = vmatprep.subr.bf16.mxu1 %v1117_v21 }
 0x565   :  { %1502 = vmatpush1.bf16.msra.mxu1 %v1116_v22 }
 0x566   :  { %1503 = vmatprep.subr.bf16.mxu1 %v1125_v23 }
 0x569   :  { %1504 = vmatpush1.bf16.msra.mxu1 %v1124_v25 }
 0x56a   :  { %v2316_v37 = vpop.eup %2315  ;;  %1505 = vmatprep.subr.bf16.mxu1 %v1133_v27 }
 0x56b   :  { %v2318_v41 = vpop.eup %2317  ;;  %v1678_v42 = vmul.f32 %v2316_v37, %v1654_v31 }
 0x56c   :  { %v1679_v61 = vmul.f32 %v2318_v41, %v1655_v38 }
 0x56d   :  { %v1727_v45 = vmul.f32 %v1690_v36, %v1678_v42  ;;  %1506 = vmatpush1.bf16.msra.mxu1 %v1132_v40 }
 0x56e   :  { %v1728_v47 = vmul.f32 %v1694_v39, %v1679_v61  ;;  %1507 = vmatprep.subr.bf16.mxu1 %v1141_v44 }
 0x56f   :  { %v1776_v48 = vadd.f32 %v1739_v43, %v1727_v45 }
 0x570   :  { %v1777_v49 = vadd.f32 %v1743_v26, %v1728_v47 }
 0x571   :  { %vm1784_vm9 = vcmp.gt.f32.partialorder %v1776_v48, 0.0  ;;  %v1792_v54 = vmul.f32 0.2, %v1776_v48  ;;  %1508 = vmatpush1.bf16.msra.mxu1 %v1140_v34 }
 0x572   :  { %vm1785_vm10 = vcmp.gt.f32.partialorder %v1777_v49, 0.0  ;;  %v1793_v55 = vmul.f32 0.2, %v1777_v49 }
 0x573   :  { %v2961_v56 = vsel %vm1784_vm9, %v1776_v48, %v1792_v54 }
 0x574   :  { %v2963_v57 = vsel %vm1785_vm10, %v1777_v49, %v1793_v55  ;;  %1510 = vmatmul.mubr.bf16.vlgmr.msra.gmra.mrb[20].mxu1 %v2908_v11 }
 0x5c7   :  { %v1347_v2 = vpop.f32.mrb[16].mxu1 }
 0x5c8   :  { %v1429_v11 = vpop.f32.mrb[8].mxu0  ;;  %v2980_v3 = vadd.f32 %v1347_v2, %v1161_v28  ;;  %v1349_v4 = vpop.f32.mrb[17].mxu1 }
 0x5c9   :  { %v2982_v5 = vadd.f32 %v1429_v11, %v1169_v29  ;;  %v1431_v51 = vpop.f32.mrb[9].mxu0  ;;  %v2984_v6 = vadd.f32 %v1349_v4, %v1165_v63  ;;  %v1351_v7 = vpop.f32.mrb[18].mxu1 }
 0x5ca   :  { %v2986_v8 = vadd.f32 %v1431_v51, %v1173_v1  ;;  %v1433_v9 = vpop.f32.mrb[10].mxu0  ;;  %v1530_v46 = vrot.slane %v2980_v3, 4  ;;  %v1568_v12 = vmul.f32 %v2980_v3, %v2980_v3  ;;  %v1352_v13 = vpop.f32.mrb[19].mxu1 }
 0x5cb   :  { %v1542_v14 = vrot.slane %v2982_v5, 4  ;;  %v1570_v10 = vmul.f32 %v2982_v5, %v2982_v5  ;;  %v1434_v62 = vpop.f32.mrb[11].mxu0  ;;  %v1536_v15 = vrot.slane %v2984_v6, 4  ;;  %v1569_v60 = vmul.f32 %v2984_v6, %v2984_v6 }
 0x5cc   :  { %v1548_v16 = vrot.slane %v2986_v8, 4  ;;  %v1571_v17 = vmul.f32 %v2986_v8, %v2986_v8  ;;  %v1531_v18 = vadd.f32 %v2980_v3, %v1530_v46  ;;  %v1586_v19 = vrot.slane %v1568_v12, 4 }
 0x5cd   :  { %v1543_v20 = vadd.f32 %v2982_v5, %v1542_v14  ;;  %v1598_v21 = vrot.slane %v1570_v10, 4  ;;  %v1537_v22 = vadd.f32 %v2984_v6, %v1536_v15  ;;  %v1592_v23 = vrot.slane %v1569_v60, 4 }
 0x5ce   :  { %v1549_v25 = vadd.f32 %v2986_v8, %v1548_v16  ;;  %v1604_v27 = vrot.slane %v1571_v17, 4  ;;  %v1532_v31 = vrot.slane %v1531_v18, 2  ;;  %v1587_v36 = vadd.f32 %v1586_v19, %v1568_v12 }
 0x5cf   :  { %v1544_v37 = vrot.slane %v1543_v20, 2  ;;  %v1599_v38 = vadd.f32 %v1598_v21, %v1570_v10  ;;  %v1538_v39 = vrot.slane %v1537_v22, 2  ;;  %v1593_v40 = vadd.f32 %v1592_v23, %v1569_v60 }
 0x5d0   :  { %v1550_v41 = vrot.slane %v1549_v25, 2  ;;  %v1605_v42 = vadd.f32 %v1604_v27, %v1571_v17  ;;  %v1533_v43 = vadd.f32 %v1532_v31, %v1531_v18  ;;  %v1588_v44 = vrot.slane %v1587_v36, 2 }
 0x5d1   :  { %v1545_v61 = vadd.f32 %v1544_v37, %v1543_v20  ;;  %v1600_v26 = vrot.slane %v1599_v38, 2  ;;  %v1539_v45 = vadd.f32 %v1538_v39, %v1537_v22  ;;  %v1594_v47 = vrot.slane %v1593_v40, 2 }
 0x5d2   :  { %v1551_v34 = vadd.f32 %v1550_v41, %v1549_v25  ;;  %v1606_v48 = vrot.slane %v1605_v42, 2  ;;  %v1534_v49 = vrot.slane %v1533_v43, 1  ;;  %v1589_v54 = vadd.f32 %v1588_v44, %v1587_v36 }
 0x5d3   :  { %v1546_v55 = vrot.slane %v1545_v61, 1  ;;  %v1601_v28 = vadd.f32 %v1600_v26, %v1599_v38  ;;  %v1540_v29 = vrot.slane %v1539_v45, 1  ;;  %v1595_v63 = vadd.f32 %v1594_v47, %v1593_v40 }
 0x5d4   :  { %v1552_v1 = vrot.slane %v1551_v34, 1  ;;  %v1607_v2 = vadd.f32 %v1606_v48, %v1605_v42  ;;  %v1535_v11 = vadd.f32 %v1534_v49, %v1533_v43  ;;  %v1590_v4 = vrot.slane %v1589_v54, 1 }
 0x5d5   :  { %v1547_v51 = vadd.f32 %v1546_v55, %v1545_v61  ;;  %v1602_v7 = vrot.slane %v1601_v28, 1  ;;  %v1541_v9 = vadd.f32 %v1540_v29, %v1539_v45  ;;  %v1596_v46 = vrot.slane %v1595_v63, 1 }
 0x5d6   :  { %v1553_v12 = vadd.f32 %v1552_v1, %v1551_v34  ;;  %v1608_v13 = vrot.slane %v1607_v2, 1  ;;  %v1591_v14 = vadd.f32 %v1590_v4, %v1589_v54  ;;  %v1624_v10 = vmul.f32 0.125, %v1535_v11 }
 0x5d7   :  { %v1603_v62 = vadd.f32 %v1602_v7, %v1601_v28  ;;  %v1626_v15 = vmul.f32 0.125, %v1547_v51  ;;  %v1597_v60 = vadd.f32 %v1596_v46, %v1595_v63  ;;  %v1625_v16 = vmul.f32 0.125, %v1541_v9 }
 0x5d8   :  { %v1609_v17 = vadd.f32 %v1608_v13, %v1607_v2  ;;  %v1627_v18 = vmul.f32 0.125, %v1553_v12  ;;  %v1632_v19 = vmul.f32 0.125, %v1591_v14  ;;  %v1640_v20 = vmul.f32 %v1624_v10, %v1624_v10 }
 0x5d9   :  { %v1634_v21 = vmul.f32 0.125, %v1603_v62  ;;  %v1633_v22 = vmul.f32 0.125, %v1597_v60  ;;  %v1641_v23 = vmul.f32 %v1625_v16, %v1625_v16  ;;  %v1642_v25 = vmul.f32 %v1626_v15, %v1626_v15 }
 0x5da   :  { %v1648_v27 = vsub.f32 %v1632_v19, %v1640_v20  ;;  %v1635_v31 = vmul.f32 0.125, %v1609_v17  ;;  %v1643_v36 = vmul.f32 %v1627_v18, %v1627_v18  ;;  %v1656_v44 = vsub.f32 %v2980_v3, %v1624_v10 }
 0x5db   :  { %v1649_v37 = vsub.f32 %v1633_v22, %v1641_v23  ;;  %v1650_v38 = vsub.f32 %v1634_v21, %v1642_v25  ;;  %v1698_v61 = vrot.slane %v2947_v24, %v2875_v52  ;;  %v1658_v26 = vsub.f32 %v2982_v5, %v1626_v15 }
 0x5dc   :  { %v1664_v39 = vadd.f32 0.8, %v1648_v27  ;;  %v1651_v40 = vsub.f32 %v1635_v31, %v1643_v36  ;;  %v1657_v47 = vsub.f32 %v2984_v6, %v1625_v16  ;;  %v1702_v34 = vrot.slane %v2947_v24, %v2878_v53 }
 0x5dd   :  { %v1665_v41 = vadd.f32 0.8, %v1649_v37  ;;  %v1666_v42 = vadd.f32 0.8, %v1650_v38  ;;  %v1659_v48 = vsub.f32 %v2986_v8, %v1627_v18  ;;  %v1747_v55 = vrot.slane %v2949_v30, %v2875_v52 }
 0x5de   :  { %2319 = vrsqrt.f32 %v1664_v39  ;;  %v1667_v43 = vadd.f32 0.8, %v1651_v40  ;;  %v1706_v3 = vrot.slane %v2947_v24, %v2967_v58  ;;  %v1751_v5 = vrot.slane %v2949_v30, %v2878_v53 }
 0x5df   :  { %2321 = vrsqrt.f32 %v1665_v41  ;;  %v1710_v6 = vrot.slane %v2947_v24, %v2970_v59  ;;  %v1755_v8 = vrot.slane %v2949_v30, %v2967_v58  ;;  %v1759_v52 = vrot.slane %v2949_v30, %v2970_v59 }
 0x5e0   :  { %2323 = vrsqrt.f32 %v1666_v42  ;;  %v1176_v16 = vsub.s32 6, %v2823_v32  ;;  %v1180_v17 = vsub.s32 7, %v2823_v32 }
 0x5e1   :  { %2325 = vrsqrt.f32 %v1667_v43 }
 0x5e2   :  { %v1177_v18 = vrot.slane %v2926_v50, %v1176_v16  ;;  %v1181_v19 = vrot.slane %v2926_v50, %v1180_v17 }
 0x5e8   :  { %v2320_v45 = vpop.eup %2319 }
 0x5e9   :  { %v2322_v49 = vpop.eup %2321  ;;  %v1680_v54 = vmul.f32 %v2320_v45, %v1656_v44 }
 0x5ea   :  { %v2324_v28 = vpop.eup %2323  ;;  %v1681_v29 = vmul.f32 %v2322_v49, %v1657_v47 }
 0x5eb   :  { %v2326_v63 = vpop.eup %2325  ;;  %v1729_v1 = vmul.f32 %v1698_v61, %v1680_v54  ;;  %v1682_v2 = vmul.f32 %v2324_v28, %v1658_v26 }
 0x5ec   :  { %v1730_v11 = vmul.f32 %v1702_v34, %v1681_v29  ;;  %v1683_v4 = vmul.f32 %v2326_v63, %v1659_v48 }
 0x5ed   :  { %v1778_v51 = vadd.f32 %v1747_v55, %v1729_v1  ;;  %v1731_v7 = vmul.f32 %v1706_v3, %v1682_v2 }
 0x5ee   :  { %v1779_v9 = vadd.f32 %v1751_v5, %v1730_v11  ;;  %v1732_v46 = vmul.f32 %v1710_v6, %v1683_v4 }
 0x5ef   :  { %vm1786_vm11 = vcmp.gt.f32.partialorder %v1778_v51, 0.0  ;;  %v1794_v53 = vmul.f32 0.2, %v1778_v51  ;;  %v1780_v12 = vadd.f32 %v1755_v8, %v1731_v7 }
 0x5f0   :  { %vm1787_vm12 = vcmp.gt.f32.partialorder %v1779_v9, 0.0  ;;  %v1795_v13 = vmul.f32 0.2, %v1779_v9  ;;  %v1781_v14 = vadd.f32 %v1759_v52, %v1732_v46 }
 0x5f1   :  { %v3024_v10 = vsel %vm1786_vm11, %v1778_v51, %v1794_v53  ;;  %vm1788_vm13 = vcmp.gt.f32.partialorder %v1780_v12, 0.0  ;;  %v1796_v62 = vmul.f32 0.2, %v1780_v12  ;;  %v1714_v53 = vrot.slane %v2947_v24, %v1176_v16 }
 0x5f2   :  { %v3026_v58 = vsel %vm1787_vm12, %v1779_v9, %v1795_v13  ;;  %vm1789_vm14 = vcmp.gt.f32.partialorder %v1781_v14, 0.0  ;;  %v1797_v15 = vmul.f32 0.2, %v1781_v14 }
 0x5f3   :  { %v3028_v60 = vsel %vm1788_vm13, %v1780_v12, %v1796_v62 }
 0x5f4   :  { %v3030_v59 = vsel %vm1789_vm14, %v1781_v14, %v1797_v15  ;;  %v1718_v14 = vrot.slane %v2947_v24, %v1180_v17 }
 0x647   :  { %v1511_v20 = vpop.f32.mrb[20].mxu1 }
 0x648   :  { %v2220_v21 = vadd.f32 %v1511_v20, %v1177_v18  ;;  %v1513_v22 = vpop.f32.mrb[21].mxu1  ;;  %v1763_v18 = vrot.slane %v2949_v30, %v1176_v16  ;;  %v1767_v20 = vrot.slane %v2949_v30, %v1180_v17 }
 0x649   :  { %v2221_v23 = vadd.f32 %v1513_v22, %v1181_v19  ;;  %v1515_v25 = vpop.f32.mrb[22].mxu1 }
 0x64a   :  { %v1554_v27 = vrot.slane %v2220_v21, 4  ;;  %v1572_v31 = vmul.f32 %v2220_v21, %v2220_v21  ;;  %v1516_v36 = vpop.f32.mrb[23].mxu1 }
 0x64b   :  { %v1560_v37 = vrot.slane %v2221_v23, 4  ;;  %v1573_v38 = vmul.f32 %v2221_v23, %v2221_v23 }
 0x64c   :  { %v1555_v39 = vadd.f32 %v2220_v21, %v1554_v27  ;;  %v1610_v40 = vrot.slane %v1572_v31, 4 }
 0x64d   :  { %v1561_v41 = vadd.f32 %v2221_v23, %v1560_v37  ;;  %v1616_v42 = vrot.slane %v1573_v38, 4 }
 0x64e   :  { %v1556_v43 = vrot.slane %v1555_v39, 2  ;;  %v1611_v32 = vadd.f32 %v1610_v40, %v1572_v31 }
 0x64f   :  { %v1562_v44 = vrot.slane %v1561_v41, 2  ;;  %v1617_v61 = vadd.f32 %v1616_v42, %v1573_v38 }
 0x650   :  { %v1557_v26 = vadd.f32 %v1556_v43, %v1555_v39  ;;  %v1612_v50 = vrot.slane %v1611_v32, 2 }
 0x651   :  { %v1563_v45 = vadd.f32 %v1562_v44, %v1561_v41  ;;  %v1618_v47 = vrot.slane %v1617_v61, 2 }
 0x652   :  { %v1558_v34 = vrot.slane %v1557_v26, 1  ;;  %v1613_v48 = vadd.f32 %v1612_v50, %v1611_v32 }
 0x653   :  { %v1564_v49 = vrot.slane %v1563_v45, 1  ;;  %v1619_v54 = vadd.f32 %v1618_v47, %v1617_v61 }
 0x654   :  { %v1559_v55 = vadd.f32 %v1558_v34, %v1557_v26  ;;  %v1614_v3 = vrot.slane %v1613_v48, 1 }
 0x655   :  { %v1565_v28 = vadd.f32 %v1564_v49, %v1563_v45  ;;  %v1620_v29 = vrot.slane %v1619_v54, 1 }
 0x656   :  { %v1615_v5 = vadd.f32 %v1614_v3, %v1613_v48  ;;  %v1628_v6 = vmul.f32 0.125, %v1559_v55 }
 0x657   :  { %v1621_v63 = vadd.f32 %v1620_v29, %v1619_v54  ;;  %v1629_v1 = vmul.f32 0.125, %v1565_v28 }
 0x658   :  { %v1636_v2 = vmul.f32 0.125, %v1615_v5  ;;  %v1644_v8 = vmul.f32 %v1628_v6, %v1628_v6  ;;  %v1660_v46 = vsub.f32 %v2220_v21, %v1628_v6 }
 0x659   :  { %v1637_v11 = vmul.f32 0.125, %v1621_v63  ;;  %v1645_v4 = vmul.f32 %v1629_v1, %v1629_v1  ;;  %v1661_v13 = vsub.f32 %v2221_v23, %v1629_v1 }
 0x65a   :  { %v1652_v52 = vsub.f32 %v1636_v2, %v1644_v8 }
 0x65b   :  { %v1653_v51 = vsub.f32 %v1637_v11, %v1645_v4 }
 0x65c   :  { %v1668_v7 = vadd.f32 0.8, %v1652_v52 }
 0x65d   :  { %v1669_v9 = vadd.f32 0.8, %v1653_v51 }
 0x65e   :  { %2327 = vrsqrt.f32 %v1668_v7 }
 0x65f   :  { %2329 = vrsqrt.f32 %v1669_v9 }
 0x668   :  { %v2328_v12 = vpop.eup %2327 }
 0x669   :  { %v2330_v62 = vpop.eup %2329  ;;  %v1684_v15 = vmul.f32 %v2328_v12, %v1660_v46 }
 0x66a   :  { %v1685_v19 = vmul.f32 %v2330_v62, %v1661_v13 }
 0x66b   :  { %v1733_v22 = vmul.f32 %v1714_v53, %v1684_v15 }
 0x66c   :  { %v1734_v25 = vmul.f32 %v1718_v14, %v1685_v19 }
 0x66d   :  { %v1782_v27 = vadd.f32 %v1763_v18, %v1733_v22 }
 0x66e   :  { %v1783_v31 = vadd.f32 %v1767_v20, %v1734_v25 }
 0x66f   :  { %vm1790_vm15 = vcmp.gt.f32.partialorder %v1782_v27, 0.0  ;;  %v1798_v36 = vmul.f32 0.2, %v1782_v27 }
 0x670   :  { %vm1791_vm0 = vcmp.gt.f32.partialorder %v1783_v31, 0.0  ;;  %v1799_v21 = vmul.f32 0.2, %v1783_v31 }
 0x671   :  { %v3040_v37 = vsel %vm1790_vm15, %v1782_v27, %v1798_v36 }
 0x672   :  { %v3042_v23 = vsel %vm1791_vm0, %v1783_v31, %v1799_v21 }
 0x673   :  { %2543 = dma.done.wait [#allocation5 + $0x2], 16384 }
 0x674   :  { %2544 = vsyncadd [#allocation5 + $0x2], 4294950912  ;;  %v1941_v24 = vpack.c.bf16 %v2963_v57, %v2963_v57  ;;  %v1813_v16 = vld [vmem:[#allocation4 + $0x8] sm:$0xff]  ;;  %v1812_v30 = vld [vmem:[#allocation4] sm:$0xff]  ;;  %v1940_v52 = vpack.c.bf16 %v2961_v56, %v2961_v56  ;;  %v1943_v51 = vpack.c.bf16 %v3026_v58, %v3026_v58  ;;  %s3092_s19 = sld [smem:[#allocation36_spill]] }
 0x675   :  { %v1815_v17 = vld [vmem:[#allocation4 + $0x18] sm:$0xff]  ;;  %1960 = vmatprep.subr.bf16.mxu0 %v1813_v16  ;;  %v1814_v38 = vld [vmem:[#allocation4 + $0x10] sm:$0xff]  ;;  %v1817_v39 = vld [vmem:[#allocation4 + $0x28] sm:$0xff] }
 0x676   :  { %1992 = vmatprep.mubr.bf16.mxu0 %v1941_v24  ;;  %1961 = vmatpush1.bf16.msra.mxu0 %v1812_v30  ;;  %v1816_v40 = vld [vmem:[#allocation4 + $0x20] sm:$0xff]  ;;  %v1819_v41 = vld [vmem:[#allocation4 + $0x38] sm:$0xff]  ;;  %v1818_v42 = vld [vmem:[#allocation4 + $0x30] sm:$0xff] }
 0x677   :  { %1962 = vmatprep.subr.bf16.mxu0 %v1815_v17  ;;  %v1821_v43 = vld [vmem:[#allocation4 + $0x48] sm:$0xff]  ;;  %v1820_v57 = vld [vmem:[#allocation4 + $0x40] sm:$0xff]  ;;  %v1823_v32 = vld [vmem:[#allocation4 + $0x58] sm:$0xff] }
 0x678   :  { %v1822_v44 = vld [vmem:[#allocation4 + $0x50] sm:$0xff]  ;;  %v1825_v61 = vld [vmem:[#allocation4 + $0x68] sm:$0xff]  ;;  %v1824_v26 = vld [vmem:[#allocation4 + $0x60] sm:$0xff] }
 0x679   :  { %v1827_v50 = vld [vmem:[#allocation4 + $0x78] sm:$0xff]  ;;  %v1826_v45 = vld [vmem:[#allocation4 + $0x70] sm:$0xff]  ;;  %v1829_v47 = vld [vmem:[#allocation4 + $0x88] sm:$0xff] }
 0x67a   :  { %1963 = vmatpush1.bf16.msra.mxu0 %v1814_v38  ;;  %v1828_v34 = vld [vmem:[#allocation4 + $0x80] sm:$0xff]  ;;  %v1831_v48 = vld [vmem:[#allocation4 + $0x98] sm:$0xff]  ;;  %v1830_v49 = vld [vmem:[#allocation4 + $0x90] sm:$0xff] }
 0x67b   :  { %1964 = vmatprep.subr.bf16.mxu0 %v1817_v39  ;;  %v1833_v54 = vld [vmem:[#allocation4 + $0xa8] sm:$0xff]  ;;  %v1832_v55 = vld [vmem:[#allocation4 + $0xa0] sm:$0xff]  ;;  %v1835_v3 = vld [vmem:[#allocation4 + $0xb8] sm:$0xff] }
 0x67c   :  { %v1834_v28 = vld [vmem:[#allocation4 + $0xb0] sm:$0xff]  ;;  %v1837_v29 = vld [vmem:[#allocation4 + $0xc8] sm:$0xff]  ;;  %v1836_v5 = vld [vmem:[#allocation4 + $0xc0] sm:$0xff] }
 0x67d   :  { %v1839_v6 = vld [vmem:[#allocation4 + $0xd8] sm:$0xff]  ;;  %v1838_v63 = vld [vmem:[#allocation4 + $0xd0] sm:$0xff]  ;;  %v1841_v1 = vld [vmem:[#allocation4 + $0xe8] sm:$0xff] }
 0x67e   :  { %1965 = vmatpush1.bf16.msra.mxu0 %v1816_v40  ;;  %v1840_v2 = vld [vmem:[#allocation4 + $0xe0] sm:$0xff]  ;;  %v1843_v8 = vld [vmem:[#allocation4 + $0xf8] sm:$0xff]  ;;  %v1842_v11 = vld [vmem:[#allocation4 + $0xf0] sm:$0xff] }
 0x67f   :  { %1966 = vmatprep.subr.bf16.mxu0 %v1819_v41  ;;  %v1845_v4 = vld [vmem:[#allocation4 + $0x108] sm:$0xff]  ;;  %v1844_v7 = vld [vmem:[#allocation4 + $0x100] sm:$0xff]  ;;  %v1847_v9 = vld [vmem:[#allocation4 + $0x118] sm:$0xff] }
 0x680   :  { %v1846_v46 = vld [vmem:[#allocation4 + $0x110] sm:$0xff]  ;;  %v1849_v53 = vld [vmem:[#allocation4 + $0x128] sm:$0xff]  ;;  %v1848_v12 = vld [vmem:[#allocation4 + $0x120] sm:$0xff] }
 0x681   :  { %v1851_v13 = vld [vmem:[#allocation4 + $0x138] sm:$0xff]  ;;  %v1850_v56 = vld [vmem:[#allocation4 + $0x130] sm:$0xff]  ;;  %v1853_v14 = vld [vmem:[#allocation4 + $0x148] sm:$0xff] }
 0x682   :  { %1967 = vmatpush1.bf16.msra.mxu0 %v1818_v42  ;;  %v1852_v58 = vld [vmem:[#allocation4 + $0x140] sm:$0xff]  ;;  %v1855_v62 = vld [vmem:[#allocation4 + $0x158] sm:$0xff]  ;;  %v1854_v15 = vld [vmem:[#allocation4 + $0x150] sm:$0xff] }
 0x683   :  { %1968 = vmatprep.subr.bf16.mxu0 %v1821_v43  ;;  %v1857_v18 = vld [vmem:[#allocation4 + $0x168] sm:$0xff]  ;;  %v1856_v19 = vld [vmem:[#allocation4 + $0x160] sm:$0xff]  ;;  %v1859_v20 = vld [vmem:[#allocation4 + $0x178] sm:$0xff] }
 0x684   :  { %v1858_v22 = vld [vmem:[#allocation4 + $0x170] sm:$0xff]  ;;  %v1861_v25 = vld [vmem:[#allocation4 + $0x188] sm:$0xff]  ;;  %v1860_v27 = vld [vmem:[#allocation4 + $0x180] sm:$0xff] }
 0x685   :  { %v1863_v31 = vld [vmem:[#allocation4 + $0x198] sm:$0xff]  ;;  %v1862_v36 = vld [vmem:[#allocation4 + $0x190] sm:$0xff]  ;;  %v1865_v21 = vld [vmem:[#allocation4 + $0x1a8] sm:$0xff] }
 0x686   :  { %1969 = vmatpush1.bf16.msra.mxu0 %v1820_v57  ;;  %v1864_v24 = vld [vmem:[#allocation4 + $0x1a0] sm:$0xff]  ;;  %v1867_v16 = vld [vmem:[#allocation4 + $0x1b8] sm:$0xff]  ;;  %v1866_v30 = vld [vmem:[#allocation4 + $0x1b0] sm:$0xff] }
 0x687   :  { %1970 = vmatprep.subr.bf16.mxu0 %v1823_v32  ;;  %v1869_v17 = vld [vmem:[#allocation4 + $0x1c8] sm:$0xff]  ;;  %v1868_v38 = vld [vmem:[#allocation4 + $0x1c0] sm:$0xff]  ;;  %v1871_v39 = vld [vmem:[#allocation4 + $0x1d8] sm:$0xff] }
 0x688   :  { %v1870_v40 = vld [vmem:[#allocation4 + $0x1d0] sm:$0xff]  ;;  %v1873_v41 = vld [vmem:[#allocation4 + $0x1e8] sm:$0xff]  ;;  %v1872_v42 = vld [vmem:[#allocation4 + $0x1e0] sm:$0xff] }
 0x689   :  { %v1875_v43 = vld [vmem:[#allocation4 + $0x1f8] sm:$0xff]  ;;  %v1874_v57 = vld [vmem:[#allocation4 + $0x1f0] sm:$0xff]  ;;  %v1877_v32 = vld [vmem:[#allocation4 + $0x208] sm:$0xff] }
 0x68a   :  { %1971 = vmatpush1.bf16.msra.mxu0 %v1822_v44  ;;  %v1942_v44 = vpack.c.bf16 %v3024_v10, %v3024_v10  ;;  %v1882_v10 = vld [vmem:[#allocation4 + $0x230] sm:$0xff] }
 0x68b   :  { %1972 = vmatprep.subr.bf16.mxu0 %v1825_v61  ;;  %v1945_v61 = vpack.c.bf16 %v3030_v59, %v3030_v59  ;;  %v1884_v59 = vld [vmem:[#allocation4 + $0x240] sm:$0xff] }
 0x68e   :  { %1973 = vmatpush1.bf16.msra.mxu0 %v1824_v26  ;;  %v1876_v26 = vld [vmem:[#allocation4 + $0x200] sm:$0xff] }
 0x68f   :  { %1974 = vmatprep.subr.bf16.mxu0 %v1827_v50  ;;  %v1879_v50 = vld [vmem:[#allocation4 + $0x218] sm:$0xff] }
 0x692   :  { %1975 = vmatpush1.bf16.msra.mxu0 %v1826_v45  ;;  %v1878_v45 = vld [vmem:[#allocation4 + $0x210] sm:$0xff] }
 0x693   :  { %1976 = vmatprep.subr.bf16.mxu0 %v1829_v47  ;;  %v1881_v47 = vld [vmem:[#allocation4 + $0x228] sm:$0xff] }
 0x696   :  { %1977 = vmatpush1.bf16.msra.mxu0 %v1828_v34  ;;  %v1880_v34 = vld [vmem:[#allocation4 + $0x220] sm:$0xff] }
 0x697   :  { %1978 = vmatprep.subr.bf16.mxu0 %v1831_v48  ;;  %v1883_v48 = vld [vmem:[#allocation4 + $0x238] sm:$0xff] }
 0x69a   :  { %1979 = vmatpush1.bf16.msra.mxu0 %v1830_v49  ;;  %v1885_v49 = vld [vmem:[#allocation4 + $0x248] sm:$0xff] }
 0x69b   :  { %1980 = vmatprep.subr.bf16.mxu0 %v1833_v54  ;;  %v1887_v54 = vld [vmem:[#allocation4 + $0x258] sm:$0xff] }
 0x69e   :  { %1981 = vmatpush1.bf16.msra.mxu0 %v1832_v55  ;;  %v1886_v55 = vld [vmem:[#allocation4 + $0x250] sm:$0xff] }
 0x69f   :  { %1982 = vmatprep.subr.bf16.mxu0 %v1835_v3  ;;  %v1889_v3 = vld [vmem:[#allocation4 + $0x268] sm:$0xff] }
 0x6a2   :  { %1983 = vmatpush1.bf16.msra.mxu0 %v1834_v28  ;;  %v1888_v28 = vld [vmem:[#allocation4 + $0x260] sm:$0xff] }
 0x6a3   :  { %1984 = vmatprep.subr.bf16.mxu0 %v1837_v29  ;;  %v1891_v29 = vld [vmem:[#allocation4 + $0x278] sm:$0xff] }
 0x6a6   :  { %1985 = vmatpush1.bf16.msra.mxu0 %v1836_v5  ;;  %v1890_v5 = vld [vmem:[#allocation4 + $0x270] sm:$0xff] }
 0x6a7   :  { %1986 = vmatprep.subr.bf16.mxu0 %v1839_v6  ;;  %v1893_v6 = vld [vmem:[#allocation4 + $0x288] sm:$0xff] }
 0x6aa   :  { %1987 = vmatpush1.bf16.msra.mxu0 %v1838_v63  ;;  %v1892_v63 = vld [vmem:[#allocation4 + $0x280] sm:$0xff] }
 0x6ab   :  { %1988 = vmatprep.subr.bf16.mxu0 %v1841_v1  ;;  %v1895_v1 = vld [vmem:[#allocation4 + $0x298] sm:$0xff] }
 0x6ae   :  { %1989 = vmatpush1.bf16.msra.mxu0 %v1840_v2  ;;  %v1894_v2 = vld [vmem:[#allocation4 + $0x290] sm:$0xff] }
 0x6af   :  { %1990 = vmatprep.subr.bf16.mxu0 %v1843_v8  ;;  %v1897_v8 = vld [vmem:[#allocation4 + $0x2a8] sm:$0xff] }
 0x6b2   :  { %1991 = vmatpush1.bf16.msra.mxu0 %v1842_v11  ;;  %v1896_v11 = vld [vmem:[#allocation4 + $0x2a0] sm:$0xff] }
 0x6b3   :  { %2001 = vmatprep.subr.bf16.mxu0 %v1845_v4  ;;  %v1899_v4 = vld [vmem:[#allocation4 + $0x2b8] sm:$0xff] }
 0x6b5   :  { %1993 = vmatmul.mubr.bf16.vlgmr.msra.gmra.mrb[12].mxu0 %v1940_v52  ;;  %v1898_v52 = vld [vmem:[#allocation4 + $0x2b0] sm:$0xff] }
 0x6b6   :  { %2002 = vmatpush1.bf16.msra.mxu0 %v1844_v7  ;;  %2033 = vmatprep.mubr.bf16.mxu0 %v1943_v51  ;;  %v1901_v51 = vld [vmem:[#allocation4 + $0x2c8] sm:$0xff]  ;;  %v1900_v7 = vld [vmem:[#allocation4 + $0x2c0] sm:$0xff] }
 0x6b7   :  { %2003 = vmatprep.subr.bf16.mxu0 %v1847_v9  ;;  %v1903_v9 = vld [vmem:[#allocation4 + $0x2d8] sm:$0xff] }
 0x6ba   :  { %2004 = vmatpush1.bf16.msra.mxu0 %v1846_v46  ;;  %v1902_v46 = vld [vmem:[#allocation4 + $0x2d0] sm:$0xff] }
 0x6bb   :  { %2005 = vmatprep.subr.bf16.mxu0 %v1849_v53  ;;  %v1905_v53 = vld [vmem:[#allocation4 + $0x2e8] sm:$0xff] }
 0x6be   :  { %2006 = vmatpush1.bf16.msra.mxu0 %v1848_v12  ;;  %v1904_v12 = vld [vmem:[#allocation4 + $0x2e0] sm:$0xff] }
 0x6bf   :  { %2007 = vmatprep.subr.bf16.mxu0 %v1851_v13  ;;  %v1907_v13 = vld [vmem:[#allocation4 + $0x2f8] sm:$0xff] }
 0x6c2   :  { %2008 = vmatpush1.bf16.msra.mxu0 %v1850_v56  ;;  %v1906_v56 = vld [vmem:[#allocation4 + $0x2f0] sm:$0xff] }
 0x6c3   :  { %2009 = vmatprep.subr.bf16.mxu0 %v1853_v14  ;;  %v1909_v14 = vld [vmem:[#allocation4 + $0x308] sm:$0xff] }
 0x6c6   :  { %2010 = vmatpush1.bf16.msra.mxu0 %v1852_v58  ;;  %v1944_v58 = vpack.c.bf16 %v3028_v60, %v3028_v60  ;;  %v1914_v60 = vld [vmem:[#allocation4 + $0x330] sm:$0xff] }
 0x6c7   :  { %2011 = vmatprep.subr.bf16.mxu0 %v1855_v62  ;;  %v1947_v62 = vpack.c.bf16 %v3042_v23, %v3042_v23  ;;  %v1916_v23 = vld [vmem:[#allocation4 + $0x340] sm:$0xff] }
 0x6ca   :  { %2012 = vmatpush1.bf16.msra.mxu0 %v1854_v15  ;;  %v1908_v15 = vld [vmem:[#allocation4 + $0x300] sm:$0xff] }
 0x6cb   :  { %2013 = vmatprep.subr.bf16.mxu0 %v1857_v18  ;;  %v1911_v18 = vld [vmem:[#allocation4 + $0x318] sm:$0xff] }
 0x6ce   :  { %2014 = vmatpush1.bf16.msra.mxu0 %v1856_v19  ;;  %v1910_v19 = vld [vmem:[#allocation4 + $0x310] sm:$0xff] }
 0x6cf   :  { %2015 = vmatprep.subr.bf16.mxu0 %v1859_v20  ;;  %v1913_v20 = vld [vmem:[#allocation4 + $0x328] sm:$0xff] }
 0x6d2   :  { %2016 = vmatpush1.bf16.msra.mxu0 %v1858_v22  ;;  %v1912_v22 = vld [vmem:[#allocation4 + $0x320] sm:$0xff] }
 0x6d3   :  { %2017 = vmatprep.subr.bf16.mxu0 %v1861_v25  ;;  %v1915_v25 = vld [vmem:[#allocation4 + $0x338] sm:$0xff] }
 0x6d6   :  { %2018 = vmatpush1.bf16.msra.mxu0 %v1860_v27  ;;  %v1917_v27 = vld [vmem:[#allocation4 + $0x348] sm:$0xff] }
 0x6d7   :  { %2019 = vmatprep.subr.bf16.mxu0 %v1863_v31  ;;  %v1919_v31 = vld [vmem:[#allocation4 + $0x358] sm:$0xff] }
 0x6da   :  { %2020 = vmatpush1.bf16.msra.mxu0 %v1862_v36  ;;  %v1918_v36 = vld [vmem:[#allocation4 + $0x350] sm:$0xff] }
 0x6db   :  { %2021 = vmatprep.subr.bf16.mxu0 %v1865_v21  ;;  %v1921_v21 = vld [vmem:[#allocation4 + $0x368] sm:$0xff] }
 0x6de   :  { %2022 = vmatpush1.bf16.msra.mxu0 %v1864_v24  ;;  %v1920_v24 = vld [vmem:[#allocation4 + $0x360] sm:$0xff] }
 0x6df   :  { %2023 = vmatprep.subr.bf16.mxu0 %v1867_v16  ;;  %v1923_v16 = vld [vmem:[#allocation4 + $0x378] sm:$0xff] }
 0x6e2   :  { %2024 = vmatpush1.bf16.msra.mxu0 %v1866_v30  ;;  %v1922_v30 = vld [vmem:[#allocation4 + $0x370] sm:$0xff] }
 0x6e3   :  { %2025 = vmatprep.subr.bf16.mxu0 %v1869_v17  ;;  %v1925_v17 = vld [vmem:[#allocation4 + $0x388] sm:$0xff] }
 0x6e6   :  { %2026 = vmatpush1.bf16.msra.mxu0 %v1868_v38  ;;  %v1924_v38 = vld [vmem:[#allocation4 + $0x380] sm:$0xff] }
 0x6e7   :  { %2027 = vmatprep.subr.bf16.mxu0 %v1871_v39  ;;  %v1927_v39 = vld [vmem:[#allocation4 + $0x398] sm:$0xff] }
 0x6ea   :  { %2028 = vmatpush1.bf16.msra.mxu0 %v1870_v40  ;;  %v1926_v40 = vld [vmem:[#allocation4 + $0x390] sm:$0xff] }
 0x6eb   :  { %2029 = vmatprep.subr.bf16.mxu0 %v1873_v41  ;;  %v1929_v41 = vld [vmem:[#allocation4 + $0x3a8] sm:$0xff] }
 0x6ee   :  { %2030 = vmatpush1.bf16.msra.mxu0 %v1872_v42  ;;  %v1928_v42 = vld [vmem:[#allocation4 + $0x3a0] sm:$0xff] }
 0x6ef   :  { %2031 = vmatprep.subr.bf16.mxu0 %v1875_v43  ;;  %v1931_v43 = vld [vmem:[#allocation4 + $0x3b8] sm:$0xff] }
 0x6f2   :  { %2032 = vmatpush1.bf16.msra.mxu0 %v1874_v57  ;;  %v1930_v57 = vld [vmem:[#allocation4 + $0x3b0] sm:$0xff] }
 0x6f3   :  { %2042 = vmatprep.subr.bf16.mxu0 %v1877_v32  ;;  %v1933_v32 = vld [vmem:[#allocation4 + $0x3c8] sm:$0xff] }
 0x6f5   :  { %2034 = vmatmul.mubr.bf16.vlgmr.msra.gmra.mrb[12].mxu0 %v1942_v44  ;;  %v1932_v44 = vld [vmem:[#allocation4 + $0x3c0] sm:$0xff] }
 0x6f6   :  { %2043 = vmatpush1.bf16.msra.mxu0 %v1876_v26  ;;  %2074 = vmatprep.mubr.bf16.mxu0 %v1945_v61  ;;  %v1935_v61 = vld [vmem:[#allocation4 + $0x3d8] sm:$0xff]  ;;  %v1934_v26 = vld [vmem:[#allocation4 + $0x3d0] sm:$0xff] }
 0x6f7   :  { %2044 = vmatprep.subr.bf16.mxu0 %v1879_v50  ;;  %v1937_v50 = vld [vmem:[#allocation4 + $0x3e8] sm:$0xff] }
 0x6fa   :  { %2045 = vmatpush1.bf16.msra.mxu0 %v1878_v45  ;;  %v1936_v45 = vld [vmem:[#allocation4 + $0x3e0] sm:$0xff] }
 0x6fb   :  { %2046 = vmatprep.subr.bf16.mxu0 %v1881_v47  ;;  %v1939_v47 = vld [vmem:[#allocation4 + $0x3f8] sm:$0xff] }
 0x6fe   :  { %2047 = vmatpush1.bf16.msra.mxu0 %v1880_v34  ;;  %v1938_v34 = vld [vmem:[#allocation4 + $0x3f0] sm:$0xff] }
 0x6ff   :  { %2048 = vmatprep.subr.bf16.mxu0 %v1883_v48  ;;  %v1946_v48 = vpack.c.bf16 %v3040_v37, %v3040_v37 }
 0x702   :  { %2049 = vmatpush1.bf16.msra.mxu0 %v1882_v10  ;;  %v1948_v10 = vld [vmem:[#allocation19] sm:$0x3] }
 0x703   :  { %2050 = vmatprep.subr.bf16.mxu0 %v1885_v49  ;;  %v1953_v49 = vrot.slane %v1948_v10, %v2826_v33 }
 0x706   :  { %2051 = vmatpush1.bf16.msra.mxu0 %v1884_v59  ;;  %v1957_v59 = vrot.slane %v1948_v10, %v2829_v35 }
 0x707   :  { %2052 = vmatprep.subr.bf16.mxu0 %v1887_v54 }
 0x70a   :  { %2053 = vmatpush1.bf16.msra.mxu0 %v1886_v55 }
 0x70b   :  { %2054 = vmatprep.subr.bf16.mxu0 %v1889_v3 }
 0x70e   :  { %2055 = vmatpush1.bf16.msra.mxu0 %v1888_v28 }
 0x70f   :  { %2056 = vmatprep.subr.bf16.mxu0 %v1891_v29 }
 0x712   :  { %2057 = vmatpush1.bf16.msra.mxu0 %v1890_v5 }
 0x713   :  { %2058 = vmatprep.subr.bf16.mxu0 %v1893_v6 }
 0x716   :  { %2059 = vmatpush1.bf16.msra.mxu0 %v1892_v63 }
 0x717   :  { %2060 = vmatprep.subr.bf16.mxu0 %v1895_v1 }
 0x71a   :  { %2061 = vmatpush1.bf16.msra.mxu0 %v1894_v2 }
 0x71b   :  { %2062 = vmatprep.subr.bf16.mxu0 %v1897_v8 }
 0x71e   :  { %2063 = vmatpush1.bf16.msra.mxu0 %v1896_v11 }
 0x71f   :  { %2064 = vmatprep.subr.bf16.mxu0 %v1899_v4 }
 0x722   :  { %2065 = vmatpush1.bf16.msra.mxu0 %v1898_v52 }
 0x723   :  { %2066 = vmatprep.subr.bf16.mxu0 %v1901_v51 }
 0x726   :  { %2067 = vmatpush1.bf16.msra.mxu0 %v1900_v7 }
 0x727   :  { %2068 = vmatprep.subr.bf16.mxu0 %v1903_v9 }
 0x72a   :  { %2069 = vmatpush1.bf16.msra.mxu0 %v1902_v46 }
 0x72b   :  { %2070 = vmatprep.subr.bf16.mxu0 %v1905_v53 }
 0x72e   :  { %2071 = vmatpush1.bf16.msra.mxu0 %v1904_v12 }
 0x72f   :  { %2072 = vmatprep.subr.bf16.mxu0 %v1907_v13 }
 0x732   :  { %2073 = vmatpush1.bf16.msra.mxu0 %v1906_v56 }
 0x733   :  { %2083 = vmatprep.subr.bf16.mxu0 %v1909_v14 }
 0x735   :  { %2075 = vmatmul.mubr.bf16.vlgmr.msra.gmra.mrb[12].mxu0 %v1944_v58 }
 0x736   :  { %2084 = vmatpush1.bf16.msra.mxu0 %v1908_v15  ;;  %2115 = vmatprep.mubr.bf16.mxu0 %v1947_v62 }
 0x737   :  { %2085 = vmatprep.subr.bf16.mxu0 %v1911_v18 }
 0x73a   :  { %2086 = vmatpush1.bf16.msra.mxu0 %v1910_v19 }
 0x73b   :  { %2087 = vmatprep.subr.bf16.mxu0 %v1913_v20 }
 0x73e   :  { %2088 = vmatpush1.bf16.msra.mxu0 %v1912_v22 }
 0x73f   :  { %2089 = vmatprep.subr.bf16.mxu0 %v1915_v25 }
 0x742   :  { %2090 = vmatpush1.bf16.msra.mxu0 %v1914_v60 }
 0x743   :  { %2091 = vmatprep.subr.bf16.mxu0 %v1917_v27 }
 0x746   :  { %2092 = vmatpush1.bf16.msra.mxu0 %v1916_v23 }
 0x747   :  { %2093 = vmatprep.subr.bf16.mxu0 %v1919_v31 }
 0x74a   :  { %2094 = vmatpush1.bf16.msra.mxu0 %v1918_v36 }
 0x74b   :  { %2095 = vmatprep.subr.bf16.mxu0 %v1921_v21 }
 0x74e   :  { %2096 = vmatpush1.bf16.msra.mxu0 %v1920_v24 }
 0x74f   :  { %2097 = vmatprep.subr.bf16.mxu0 %v1923_v16 }
 0x752   :  { %2098 = vmatpush1.bf16.msra.mxu0 %v1922_v30 }
 0x753   :  { %2099 = vmatprep.subr.bf16.mxu0 %v1925_v17 }
 0x756   :  { %2100 = vmatpush1.bf16.msra.mxu0 %v1924_v38 }
 0x757   :  { %2101 = vmatprep.subr.bf16.mxu0 %v1927_v39 }
 0x75a   :  { %2102 = vmatpush1.bf16.msra.mxu0 %v1926_v40 }
 0x75b   :  { %2103 = vmatprep.subr.bf16.mxu0 %v1929_v41 }
 0x75e   :  { %2104 = vmatpush1.bf16.msra.mxu0 %v1928_v42 }
 0x75f   :  { %2105 = vmatprep.subr.bf16.mxu0 %v1931_v43 }
 0x762   :  { %2106 = vmatpush1.bf16.msra.mxu0 %v1930_v57 }
 0x763   :  { %2107 = vmatprep.subr.bf16.mxu0 %v1933_v32 }
 0x766   :  { %2108 = vmatpush1.bf16.msra.mxu0 %v1932_v44 }
 0x767   :  { %2109 = vmatprep.subr.bf16.mxu0 %v1935_v61 }
 0x76a   :  { %2110 = vmatpush1.bf16.msra.mxu0 %v1934_v26 }
 0x76b   :  { %2111 = vmatprep.subr.bf16.mxu0 %v1937_v50 }
 0x76e   :  { %2112 = vmatpush1.bf16.msra.mxu0 %v1936_v45 }
 0x76f   :  { %2113 = vmatprep.subr.bf16.mxu0 %v1939_v47 }
 0x772   :  { %2114 = vmatpush1.bf16.msra.mxu0 %v1938_v34 }
 0x775   :  { %2116 = vmatmul.mubr.bf16.vlgmr.msra.gmra.mrb[12].mxu0 %v1946_v48 }
 0x848   :  { %v2117_v54 = vpop.f32.mrb[12].mxu0 }
 0x849   :  { %v2222_v55 = vadd.f32 %v2117_v54, %v1953_v49  ;;  %v2119_v3 = vpop.f32.mrb[13].mxu0 }
 0x84a   :  { %v2223_v28 = vadd.f32 %v2119_v3, %v1957_v59  ;;  %v2121_v29 = vpop.f32.mrb[14].mxu0 }
 0x84b   :  { %vm2124_vm1 = vcmp.gt.f32.partialorder %v2222_v55, 0.0  ;;  %v2122_v5 = vpop.f32.mrb[15].mxu0 }
 0x84c   :  { %v2194_v6 = vsel %vm2124_vm1, 1.0, %v2557_v0  ;;  %vm2125_vm2 = vcmp.gt.f32.partialorder %v2223_v28, 0.0 }
 0x84d   :  { %v2195_v63 = vsel %vm2125_vm2, 1.0, %v2557_v0 }
 0x84e   :  { %v2200_v37 = vpack.c.bf16 %v2195_v63, %v2194_v6 }
 0x850   :  { %2138 = vst [vmem:[%s3092_s19] sm:$0xff] %v2200_v37 }
 0x851   :  { %2143 = vsyncpa [#allocation7], 1 }
 0x852   :  { %2144 = vsyncpa [#allocation9], 1 }
 0x853   :  { %2145 = vsyncpa [#allocation12], 1 }
 0x854   :  { %2146 = vsyncpa [#allocation15], 1 }
 0x855   :  { %2147 = vsyncpa [#allocation18], 1 }
 0x856   :  { %2148 = vsyncmov [#allocation5] }
 0x859   :  { %s2149_s17 = vpop.sfrf %2148 }
 0x85a   :  { %p2197_p2 = scmp.ne.s32.totalorder %s2149_s17, 0 }
 0x85c   :  { %2153 = shalt.err (%p2197_p2)  }
 0x85d   :  { %2155 = vsyncmov [#allocation5 + $0x1] }
 0x860   :  { %s2156_s29 = vpop.sfrf %2155 }
 0x861   :  { %p2198_p3 = scmp.ne.s32.totalorder %s2156_s29, 0 }
 0x863   :  { %2160 = shalt.err (%p2198_p3)  }
 0x864   :  { %2162 = vsyncmov [#allocation5 + $0x2] }
 0x867   :  { %s2163_s27 = vpop.sfrf %2162 }
 0x868   :  { %p2199_p4 = scmp.ne.s32.totalorder %s2163_s27, 0 }
 0x86a   :  { %2167 = shalt.err (%p2199_p4)  }

</bundles_post_ra>
